<compile_context>
chip_gen: v6e
topology: v6e:2x2x1
jax: 0.10.0
libtpu: 0.0.40
codegen_flags: <defaults>
</compile_context>

<pallas_src>
import functools
import numpy as np
import jax
import jax.numpy as jnp
from jax.experimental import pallas as pl
from jax.experimental.pallas import tpu as pltpu


def _softplus_b05(x):
    # nn.Softplus(beta=0.5, threshold=14): (1/beta)*log(1+exp(beta*x)) unless
    # beta*x > threshold, in which case it reverts to the identity.
    bx = 0.5 * x
    safe = jnp.minimum(bx, 14.0)
    return jnp.where(bx > 14.0, x, 2.0 * jnp.log(1.0 + jnp.exp(safe)))


# --------------------------- fused MGCN kernel ----------------------------- #

def _mgcn_fused_kernel(node0_ref, edge0_ref, dist_ref, centers_ref,
                       s_src_ref, s_dst_t_ref,
                       w_in, b_in, wd1, bd1, wd2, bd2, we, be,
                       wo1, bo1, wo2, bo2, wpe, bpe,
                       out_ref, *, n_layers, gamma):
    f32 = jnp.float32
    bf16 = jnp.bfloat16

    # RBFExpansion, computed once and reused by every layer (stays resident).
    radial = dist_ref[...] - centers_ref[...]            # (E,1)-(1,D) -> (E,D)
    exp_dists = jnp.exp((-gamma) * radial * radial)

    s_src = s_src_ref[...]       # (E, V) bf16 one-hot (gather operator)
    s_dst_t = s_dst_t_ref[...]   # (V, E) bf16 one-hot^T (scatter operator),
    # pre-transposed in the wrapper -> MXU consumes it directly, no per-layer
    # XLU transpose of an (E, V) tile.

    node = node0_ref[...]                                # (V, F) f32
    edge = edge0_ref[...]                                # (E, F) f32

    layer_nodes = [node]

    # Static unroll over layers; weights indexed with a static layer id.
    for l in range(n_layers):
        # project_in_node_feats
        h = jnp.dot(node, w_in[l], preferred_element_type=f32) + b_in[l]

        # VEConv.update_dists: Linear -> Softplus(0.5, 14) -> Linear
        d = jnp.dot(exp_dists, wd1[l], preferred_element_type=f32) + bd1[l]
        d = _softplus_b05(d)
        d = jnp.dot(d, wd2[l], preferred_element_type=f32) + bd2[l]

        # VEConv.update_edge_feats
        he = jnp.dot(edge, we[l], preferred_element_type=f32) + be[l]

        # Message passing (u_mul_e + sum and copy_e + sum):
        #   gather src node feats onto edges, then scatter-add to dst nodes.
        # bf16 MXU operands (one-hots are exact in bf16), f32 accumulation.
        h_src = jnp.dot(s_src, h.astype(bf16),
                        preferred_element_type=f32)              # (E, F)
        msg = (h_src * d + he).astype(bf16)                      # (E, F)
        nh = jnp.dot(s_dst_t, msg, preferred_element_type=f32)   # (V, F)

        # project_out_node_feats: Linear -> Softplus -> Linear, residual add
        o = jnp.dot(nh, wo1[l], preferred_element_type=f32) + bo1[l]
        o = _softplus_b05(o)
        o = jnp.dot(o, wo2[l], preferred_element_type=f32) + bo2[l]
        node = node + o

        # project_edge_feats: Linear -> Softplus
        pe = jnp.dot(he, wpe[l], preferred_element_type=f32) + bpe[l]
        edge = _softplus_b05(pe)

        layer_nodes.append(node)

    # ONE full-width (V, F*(n_layers+1)) store: 128-lane aligned -> unmasked
    # vst, instead of n_layers+1 masked 32-lane partial stores.
    out_ref[...] = jnp.concatenate(layer_nodes, axis=1)


def mgcn_fused(params, node_feats, edge_feats, edge_dists, centers,
               s_src, s_dst_t, gamma, n_layers):
    V, F = node_feats.shape
    E = edge_feats.shape[0]
    D = centers.shape[1]
    st = params['stacked']
    args = (node_feats, edge_feats, edge_dists, centers, s_src, s_dst_t,
            st['w_in'], st['b_in'], st['wd1'], st['bd1'], st['wd2'], st['bd2'],
            st['we'], st['be'], st['wo1'], st['bo1'], st['wo2'], st['bo2'],
            st['wpe'], st['bpe'])
    kernel = functools.partial(_mgcn_fused_kernel,
                               n_layers=n_layers, gamma=gamma)

    out_bytes = V * F * (n_layers + 1) * 4
    arg_bytes = sum(int(np.prod(a.shape)) * a.dtype.itemsize for a in args)
    # Ungridded all-VMEM kernel: raise the scoped VMEM limit explicitly, but
    # stay within v7x's 64 MiB physical VMEM per TensorCore.
    vmem_limit = int(min(max(4 * (arg_bytes + out_bytes) + (8 << 20),
                             32 << 20), 64 << 20))

    flops_per_layer = 2 * (V * F * F                 # project_in
                           + E * D * F + E * F * F   # update_dists
                           + E * F * F               # update_edge_feats
                           + 2 * E * V * F           # gather + scatter
                           + 2 * V * F * F           # project_out
                           + E * F * F)              # project_edge
    cost = pl.CostEstimate(
        flops=int(n_layers * flops_per_layer),
        transcendentals=int(E * D + n_layers * (2 * E * F + V * F)),
        bytes_accessed=int(arg_bytes + out_bytes))

    return pl.pallas_call(
        kernel,
        out_shape=jax.ShapeDtypeStruct((V, F * (n_layers + 1)), jnp.float32),
        in_specs=[pl.BlockSpec(memory_space=pltpu.MemorySpace.VMEM)] * len(args),
        out_specs=pl.BlockSpec(memory_space=pltpu.MemorySpace.VMEM),
        compiler_params=pltpu.CompilerParams(vmem_limit_bytes=vmem_limit),
        cost_estimate=cost,
    )(*args)


# ----------------------------- parameter init ------------------------------ #

def _linear(key, fan_in, fan_out):
    k1, k2 = jax.random.split(key)
    bound = 1.0 / float(np.sqrt(fan_in))
    w = jax.random.uniform(k1, (fan_in, fan_out), jnp.float32, -bound, bound)
    b = jax.random.uniform(k2, (1, fan_out), jnp.float32, -bound, bound)
    return w, b


def init_params(key, feats, dist_feats, n_layers, num_node_types, num_edge_types):
    keys = jax.random.split(key, 2 + n_layers)
    layers = []
    for l in range(n_layers):
        lk = jax.random.split(keys[2 + l], 7)
        w_in, b_in = _linear(lk[0], feats, feats)
        wd1, bd1 = _linear(lk[1], dist_feats, feats)
        wd2, bd2 = _linear(lk[2], feats, feats)
        we, be = _linear(lk[3], feats, feats)
        wo1, bo1 = _linear(lk[4], feats, feats)
        wo2, bo2 = _linear(lk[5], feats, feats)
        wpe, bpe = _linear(lk[6], feats, feats)
        layers.append(dict(w_in=w_in, b_in=b_in, wd1=wd1, bd1=bd1,
                           wd2=wd2, bd2=bd2, we=we, be=be,
                           wo1=wo1, bo1=bo1, wo2=wo2, bo2=bo2,
                           wpe=wpe, bpe=bpe))
    # Stack per-layer params into (L, in, out) / (L, 1, out) arrays so the
    # fused kernel takes a fixed, small argument list.
    stacked = {name: jnp.stack([lyr[name] for lyr in layers])
               for name in layers[0]}
    return {
        'node_embed': jax.random.normal(keys[0], (num_node_types, feats),
                                        jnp.float32),
        'edge_embed': jax.random.normal(keys[1], (num_edge_types, feats),
                                        jnp.float32),
        'stacked': stacked,
    }


# -------------------------------- forward ---------------------------------- #

def mgcn_forward(params, node_types, src, dst, edge_dists, centers, gamma,
                 n_layers):
    V = node_types.shape[0]

    # Embedding lookups + edge-type pairing function (data-dependent gather
    # stays in plain JAX glue; all matmul/elementwise hot-path work is in the
    # single fused Pallas kernel).
    node_feats = jnp.take(params['node_embed'], node_types, axis=0)
    t1 = node_types[src]
    t2 = node_types[dst]
    edge_types = t1 * t2 + ((jnp.abs(t1 - t2) - 1) ** 2) // 4
    edge_feats = jnp.take(params['edge_embed'], edge_types, axis=0)

    # Dense gather/scatter operators (exact in bf16, halves footprint vs f32).
    # The scatter operator is built directly in its transposed (V, E)
    # orientation so no transpose is ever materialized, in XLA or the kernel.
    s_src = jax.nn.one_hot(src, V, dtype=jnp.bfloat16)                  # (E, V)
    s_dst_t = (jnp.arange(V, dtype=dst.dtype)[:, None] == dst[None, :]
               ).astype(jnp.bfloat16)                                   # (V, E)

    return mgcn_fused(params, node_feats, edge_feats, edge_dists, centers,
                      s_src, s_dst_t, gamma, n_layers)


# ----------------------- pure-JAX f32 reference ----------------------------- #

def mgcn_reference(params, node_types, src, dst, edge_dists, centers, gamma,
                   n_layers):
    st = params['stacked']
    V = node_types.shape[0]
    node = jnp.take(params['node_embed'], node_types, axis=0)
    t1 = node_types[src]
    t2 = node_types[dst]
    edge_types = t1 * t2 + ((jnp.abs(t1 - t2) - 1) ** 2) // 4
    edge = jnp.take(params['edge_embed'], edge_types, axis=0)
    radial = edge_dists - centers
    exp_dists = jnp.exp(-gamma * radial * radial)
    outs = [node]
    for l in range(n_layers):
        h = node @ st['w_in'][l] + st['b_in'][l]
        d = exp_dists @ st['wd1'][l] + st['bd1'][l]
        d = _softplus_b05(d)
        d = d @ st['wd2'][l] + st['bd2'][l]
        he = edge @ st['we'][l] + st['be'][l]
        msg = h[src] * d + he
        nh = jax.ops.segment_sum(msg, dst, num_segments=V)
        o = nh @ st['wo1'][l] + st['bo1'][l]
        o = _softplus_b05(o)
        o = o @ st['wo2'][l] + st['bo2'][l]
        node = node + o
        edge = _softplus_b05(he @ st['wpe'][l] + st['bpe'][l])
        outs.append(node)
    return jnp.concatenate(outs, axis=1)


if __name__ == "__main__":
    feats = 32
    n_layers = 3
    num_node_types = 10
    num_edge_types = 128
    cutoff = 8.0
    gap = 0.25
    V, E = 16, 48

    # RBFExpansion: centers = linspace(0, cutoff, ceil(cutoff/gap)), gamma = 1/gap
    num_centers = int(np.ceil((cutoff - 0.0) / gap))     # 32 -> dist_feats
    centers = jnp.asarray(np.linspace(0.0, cutoff, num_centers),
                          dtype=jnp.float32).reshape(1, -1)
    gamma = 1.0 / gap

    key = jax.random.PRNGKey(0)
    kp, kn, ks, kd, kdist = jax.random.split(key, 5)
    params = init_params(kp, feats, num_centers, n_layers,
                         num_node_types, num_edge_types)
    node_types = jax.random.randint(kn, (V,), 0, num_node_types, dtype=jnp.int32)
    src = jax.random.randint(ks, (E,), 0, V, dtype=jnp.int32)
    dst = jax.random.randint(kd, (E,), 0, V, dtype=jnp.int32)
    edge_dists = jax.random.uniform(kdist, (E, 1), jnp.float32, 0.5, cutoff)

    out = mgcn_forward(params, node_types, src, dst, edge_dists, centers,
                       gamma, n_layers)
    jax.block_until_ready(out)
    assert out.shape == (V, feats * (n_layers + 1)), out.shape
    assert bool(jnp.all(jnp.isfinite(out)))

    # Tolerance-asserted pure-JAX f32 reference: the kernel deliberately casts
    # gathered node feats / edge messages to bf16 before the MXU, so allow a
    # small drift while catching any wiring/indexing error.
    ref = mgcn_reference(params, node_types, src, dst, edge_dists, centers,
                         gamma, n_layers)
    np.testing.assert_allclose(np.asarray(out), np.asarray(ref),
                               rtol=5e-2, atol=5e-2)
    print("KERNEL_OK")
</pallas_src>

<mosaic_0001>
module attributes {stable_mosaic.version = 11 : i64} {
  func.func @_mgcn_fused_kernel(%arg0: memref<16x32xf32, #tpu.memory_space<vmem>>, %arg1: memref<48x32xf32, #tpu.memory_space<vmem>>, %arg2: memref<48x1xf32, #tpu.memory_space<vmem>>, %arg3: memref<1x32xf32, #tpu.memory_space<vmem>>, %arg4: memref<48x16xbf16, #tpu.memory_space<vmem>>, %arg5: memref<16x48xbf16, #tpu.memory_space<vmem>>, %arg6: memref<3x32x32xf32, #tpu.memory_space<vmem>>, %arg7: memref<3x1x32xf32, #tpu.memory_space<vmem>>, %arg8: memref<3x32x32xf32, #tpu.memory_space<vmem>>, %arg9: memref<3x1x32xf32, #tpu.memory_space<vmem>>, %arg10: memref<3x32x32xf32, #tpu.memory_space<vmem>>, %arg11: memref<3x1x32xf32, #tpu.memory_space<vmem>>, %arg12: memref<3x32x32xf32, #tpu.memory_space<vmem>>, %arg13: memref<3x1x32xf32, #tpu.memory_space<vmem>>, %arg14: memref<3x32x32xf32, #tpu.memory_space<vmem>>, %arg15: memref<3x1x32xf32, #tpu.memory_space<vmem>>, %arg16: memref<3x32x32xf32, #tpu.memory_space<vmem>>, %arg17: memref<3x1x32xf32, #tpu.memory_space<vmem>>, %arg18: memref<3x32x32xf32, #tpu.memory_space<vmem>>, %arg19: memref<3x1x32xf32, #tpu.memory_space<vmem>>, %arg20: memref<16x128xf32, #tpu.memory_space<vmem>>) attributes {dimension_semantics = [], scalar_prefetch = 0 : i64, scratch_operands = 0 : i64, tpu.core_type = #tpu.core_type<tc>} {
    %c0 = arith.constant 0 : index
    %c0_0 = arith.constant 0 : index
    %0 = vector.load %arg2[%c0, %c0_0] : memref<48x1xf32, #tpu.memory_space<vmem>>, vector<48x1xf32>
    %c0_1 = arith.constant 0 : index
    %c0_2 = arith.constant 0 : index
    %1 = vector.load %arg3[%c0_1, %c0_2] : memref<1x32xf32, #tpu.memory_space<vmem>>, vector<1x32xf32>
    %2 = vector.broadcast %0 : vector<48x1xf32> to vector<48x32xf32>
    %3 = vector.broadcast %1 : vector<1x32xf32> to vector<48x32xf32>
    %4 = arith.subf %2, %3 : vector<48x32xf32>
    %cst = arith.constant -4.000000e+00 : f32
    %5 = vector.broadcast %cst : f32 to vector<48x32xf32>
    %6 = arith.mulf %5, %4 : vector<48x32xf32>
    %7 = arith.mulf %6, %4 : vector<48x32xf32>
    %8 = math.exp %7 : vector<48x32xf32>
    %c0_3 = arith.constant 0 : index
    %c0_4 = arith.constant 0 : index
    %9 = vector.load %arg4[%c0_3, %c0_4] : memref<48x16xbf16, #tpu.memory_space<vmem>>, vector<48x16xbf16>
    %c0_5 = arith.constant 0 : index
    %c0_6 = arith.constant 0 : index
    %10 = vector.load %arg5[%c0_5, %c0_6] : memref<16x48xbf16, #tpu.memory_space<vmem>>, vector<16x48xbf16>
    %c0_7 = arith.constant 0 : index
    %c0_8 = arith.constant 0 : index
    %11 = vector.load %arg0[%c0_7, %c0_8] : memref<16x32xf32, #tpu.memory_space<vmem>>, vector<16x32xf32>
    %c0_9 = arith.constant 0 : index
    %c0_10 = arith.constant 0 : index
    %12 = vector.load %arg1[%c0_9, %c0_10] : memref<48x32xf32, #tpu.memory_space<vmem>>, vector<48x32xf32>
    %c0_11 = arith.constant 0 : index
    %c0_12 = arith.constant 0 : index
    %c0_13 = arith.constant 0 : index
    %13 = vector.load %arg6[%c0_11, %c0_12, %c0_13] : memref<3x32x32xf32, #tpu.memory_space<vmem>>, vector<1x32x32xf32>
    %14 = vector.shape_cast %13 : vector<1x32x32xf32> to vector<32x32xf32>
    %cst_14 = arith.constant dense<0.000000e+00> : vector<16x32xf32>
    %15 = tpu.matmul %11, %14, %cst_14 {dimension_numbers = #tpu.dot_dimension_numbers<[1], [0], [0], [1], [0, 0, 1, 1], [], []>} : vector<16x32xf32>, vector<32x32xf32>, vector<16x32xf32> -> vector<16x32xf32>
    %c0_15 = arith.constant 0 : index
    %c0_16 = arith.constant 0 : index
    %c0_17 = arith.constant 0 : index
    %16 = vector.load %arg7[%c0_15, %c0_16, %c0_17] : memref<3x1x32xf32, #tpu.memory_space<vmem>>, vector<1x1x32xf32>
    %17 = vector.shape_cast %16 : vector<1x1x32xf32> to vector<1x32xf32>
    %18 = vector.broadcast %17 : vector<1x32xf32> to vector<16x32xf32>
    %19 = arith.addf %15, %18 : vector<16x32xf32>
    %c0_18 = arith.constant 0 : index
    %c0_19 = arith.constant 0 : index
    %c0_20 = arith.constant 0 : index
    %20 = vector.load %arg8[%c0_18, %c0_19, %c0_20] : memref<3x32x32xf32, #tpu.memory_space<vmem>>, vector<1x32x32xf32>
    %21 = vector.shape_cast %20 : vector<1x32x32xf32> to vector<32x32xf32>
    %cst_21 = arith.constant dense<0.000000e+00> : vector<48x32xf32>
    %22 = tpu.matmul %8, %21, %cst_21 {dimension_numbers = #tpu.dot_dimension_numbers<[1], [0], [0], [1], [0, 0, 1, 1], [], []>} : vector<48x32xf32>, vector<32x32xf32>, vector<48x32xf32> -> vector<48x32xf32>
    %c0_22 = arith.constant 0 : index
    %c0_23 = arith.constant 0 : index
    %c0_24 = arith.constant 0 : index
    %23 = vector.load %arg9[%c0_22, %c0_23, %c0_24] : memref<3x1x32xf32, #tpu.memory_space<vmem>>, vector<1x1x32xf32>
    %24 = vector.shape_cast %23 : vector<1x1x32xf32> to vector<1x32xf32>
    %25 = vector.broadcast %24 : vector<1x32xf32> to vector<48x32xf32>
    %26 = arith.addf %22, %25 : vector<48x32xf32>
    %cst_25 = arith.constant 5.000000e-01 : f32
    %27 = vector.broadcast %cst_25 : f32 to vector<48x32xf32>
    %28 = arith.mulf %27, %26 : vector<48x32xf32>
    %cst_26 = arith.constant 1.400000e+01 : f32
    %29 = vector.broadcast %cst_26 : f32 to vector<48x32xf32>
    %30 = arith.minimumf %28, %29 : vector<48x32xf32>
    %cst_27 = arith.constant 1.400000e+01 : f32
    %31 = vector.broadcast %cst_27 : f32 to vector<48x32xf32>
    %32 = arith.cmpf ogt, %28, %31 : vector<48x32xf32>
    %33 = math.exp %30 : vector<48x32xf32>
    %cst_28 = arith.constant 1.000000e+00 : f32
    %34 = vector.broadcast %cst_28 : f32 to vector<48x32xf32>
    %35 = arith.addf %34, %33 : vector<48x32xf32>
    %36 = math.log %35 : vector<48x32xf32>
    %cst_29 = arith.constant 2.000000e+00 : f32
    %37 = vector.broadcast %cst_29 : f32 to vector<48x32xf32>
    %38 = arith.mulf %37, %36 : vector<48x32xf32>
    %39 = arith.select %32, %26, %38 : vector<48x32xi1>, vector<48x32xf32>
    %c0_30 = arith.constant 0 : index
    %c0_31 = arith.constant 0 : index
    %c0_32 = arith.constant 0 : index
    %40 = vector.load %arg10[%c0_30, %c0_31, %c0_32] : memref<3x32x32xf32, #tpu.memory_space<vmem>>, vector<1x32x32xf32>
    %41 = vector.shape_cast %40 : vector<1x32x32xf32> to vector<32x32xf32>
    %cst_33 = arith.constant dense<0.000000e+00> : vector<48x32xf32>
    %42 = tpu.matmul %39, %41, %cst_33 {dimension_numbers = #tpu.dot_dimension_numbers<[1], [0], [0], [1], [0, 0, 1, 1], [], []>} : vector<48x32xf32>, vector<32x32xf32>, vector<48x32xf32> -> vector<48x32xf32>
    %c0_34 = arith.constant 0 : index
    %c0_35 = arith.constant 0 : index
    %c0_36 = arith.constant 0 : index
    %43 = vector.load %arg11[%c0_34, %c0_35, %c0_36] : memref<3x1x32xf32, #tpu.memory_space<vmem>>, vector<1x1x32xf32>
    %44 = vector.shape_cast %43 : vector<1x1x32xf32> to vector<1x32xf32>
    %45 = vector.broadcast %44 : vector<1x32xf32> to vector<48x32xf32>
    %46 = arith.addf %42, %45 : vector<48x32xf32>
    %c0_37 = arith.constant 0 : index
    %c0_38 = arith.constant 0 : index
    %c0_39 = arith.constant 0 : index
    %47 = vector.load %arg12[%c0_37, %c0_38, %c0_39] : memref<3x32x32xf32, #tpu.memory_space<vmem>>, vector<1x32x32xf32>
    %48 = vector.shape_cast %47 : vector<1x32x32xf32> to vector<32x32xf32>
    %cst_40 = arith.constant dense<0.000000e+00> : vector<48x32xf32>
    %49 = tpu.matmul %12, %48, %cst_40 {dimension_numbers = #tpu.dot_dimension_numbers<[1], [0], [0], [1], [0, 0, 1, 1], [], []>} : vector<48x32xf32>, vector<32x32xf32>, vector<48x32xf32> -> vector<48x32xf32>
    %c0_41 = arith.constant 0 : index
    %c0_42 = arith.constant 0 : index
    %c0_43 = arith.constant 0 : index
    %50 = vector.load %arg13[%c0_41, %c0_42, %c0_43] : memref<3x1x32xf32, #tpu.memory_space<vmem>>, vector<1x1x32xf32>
    %51 = vector.shape_cast %50 : vector<1x1x32xf32> to vector<1x32xf32>
    %52 = vector.broadcast %51 : vector<1x32xf32> to vector<48x32xf32>
    %53 = arith.addf %49, %52 : vector<48x32xf32>
    %54 = arith.truncf %19 : vector<16x32xf32> to vector<16x32xbf16>
    %cst_44 = arith.constant dense<0.000000e+00> : vector<48x32xf32>
    %55 = tpu.matmul %9, %54, %cst_44 {dimension_numbers = #tpu.dot_dimension_numbers<[1], [0], [0], [1], [0, 0, 1, 1], [], []>} : vector<48x16xbf16>, vector<16x32xbf16>, vector<48x32xf32> -> vector<48x32xf32>
    %56 = arith.mulf %55, %46 : vector<48x32xf32>
    %57 = arith.addf %56, %53 : vector<48x32xf32>
    %58 = arith.truncf %57 : vector<48x32xf32> to vector<48x32xbf16>
    %cst_45 = arith.constant dense<0.000000e+00> : vector<16x32xf32>
    %59 = tpu.matmul %10, %58, %cst_45 {dimension_numbers = #tpu.dot_dimension_numbers<[1], [0], [0], [1], [0, 0, 1, 1], [], []>} : vector<16x48xbf16>, vector<48x32xbf16>, vector<16x32xf32> -> vector<16x32xf32>
    %c0_46 = arith.constant 0 : index
    %c0_47 = arith.constant 0 : index
    %c0_48 = arith.constant 0 : index
    %60 = vector.load %arg14[%c0_46, %c0_47, %c0_48] : memref<3x32x32xf32, #tpu.memory_space<vmem>>, vector<1x32x32xf32>
    %61 = vector.shape_cast %60 : vector<1x32x32xf32> to vector<32x32xf32>
    %cst_49 = arith.constant dense<0.000000e+00> : vector<16x32xf32>
    %62 = tpu.matmul %59, %61, %cst_49 {dimension_numbers = #tpu.dot_dimension_numbers<[1], [0], [0], [1], [0, 0, 1, 1], [], []>} : vector<16x32xf32>, vector<32x32xf32>, vector<16x32xf32> -> vector<16x32xf32>
    %c0_50 = arith.constant 0 : index
    %c0_51 = arith.constant 0 : index
    %c0_52 = arith.constant 0 : index
    %63 = vector.load %arg15[%c0_50, %c0_51, %c0_52] : memref<3x1x32xf32, #tpu.memory_space<vmem>>, vector<1x1x32xf32>
    %64 = vector.shape_cast %63 : vector<1x1x32xf32> to vector<1x32xf32>
    %65 = vector.broadcast %64 : vector<1x32xf32> to vector<16x32xf32>
    %66 = arith.addf %62, %65 : vector<16x32xf32>
    %cst_53 = arith.constant 5.000000e-01 : f32
    %67 = vector.broadcast %cst_53 : f32 to vector<16x32xf32>
    %68 = arith.mulf %67, %66 : vector<16x32xf32>
    %cst_54 = arith.constant 1.400000e+01 : f32
    %69 = vector.broadcast %cst_54 : f32 to vector<16x32xf32>
    %70 = arith.minimumf %68, %69 : vector<16x32xf32>
    %cst_55 = arith.constant 1.400000e+01 : f32
    %71 = vector.broadcast %cst_55 : f32 to vector<16x32xf32>
    %72 = arith.cmpf ogt, %68, %71 : vector<16x32xf32>
    %73 = math.exp %70 : vector<16x32xf32>
    %cst_56 = arith.constant 1.000000e+00 : f32
    %74 = vector.broadcast %cst_56 : f32 to vector<16x32xf32>
    %75 = arith.addf %74, %73 : vector<16x32xf32>
    %76 = math.log %75 : vector<16x32xf32>
    %cst_57 = arith.constant 2.000000e+00 : f32
    %77 = vector.broadcast %cst_57 : f32 to vector<16x32xf32>
    %78 = arith.mulf %77, %76 : vector<16x32xf32>
    %79 = arith.select %72, %66, %78 : vector<16x32xi1>, vector<16x32xf32>
    %c0_58 = arith.constant 0 : index
    %c0_59 = arith.constant 0 : index
    %c0_60 = arith.constant 0 : index
    %80 = vector.load %arg16[%c0_58, %c0_59, %c0_60] : memref<3x32x32xf32, #tpu.memory_space<vmem>>, vector<1x32x32xf32>
    %81 = vector.shape_cast %80 : vector<1x32x32xf32> to vector<32x32xf32>
    %cst_61 = arith.constant dense<0.000000e+00> : vector<16x32xf32>
    %82 = tpu.matmul %79, %81, %cst_61 {dimension_numbers = #tpu.dot_dimension_numbers<[1], [0], [0], [1], [0, 0, 1, 1], [], []>} : vector<16x32xf32>, vector<32x32xf32>, vector<16x32xf32> -> vector<16x32xf32>
    %c0_62 = arith.constant 0 : index
    %c0_63 = arith.constant 0 : index
    %c0_64 = arith.constant 0 : index
    %83 = vector.load %arg17[%c0_62, %c0_63, %c0_64] : memref<3x1x32xf32, #tpu.memory_space<vmem>>, vector<1x1x32xf32>
    %84 = vector.shape_cast %83 : vector<1x1x32xf32> to vector<1x32xf32>
    %85 = vector.broadcast %84 : vector<1x32xf32> to vector<16x32xf32>
    %86 = arith.addf %82, %85 : vector<16x32xf32>
    %87 = arith.addf %11, %86 : vector<16x32xf32>
    %c0_65 = arith.constant 0 : index
    %c0_66 = arith.constant 0 : index
    %c0_67 = arith.constant 0 : index
    %88 = vector.load %arg18[%c0_65, %c0_66, %c0_67] : memref<3x32x32xf32, #tpu.memory_space<vmem>>, vector<1x32x32xf32>
    %89 = vector.shape_cast %88 : vector<1x32x32xf32> to vector<32x32xf32>
    %cst_68 = arith.constant dense<0.000000e+00> : vector<48x32xf32>
    %90 = tpu.matmul %53, %89, %cst_68 {dimension_numbers = #tpu.dot_dimension_numbers<[1], [0], [0], [1], [0, 0, 1, 1], [], []>} : vector<48x32xf32>, vector<32x32xf32>, vector<48x32xf32> -> vector<48x32xf32>
    %c0_69 = arith.constant 0 : index
    %c0_70 = arith.constant 0 : index
    %c0_71 = arith.constant 0 : index
    %91 = vector.load %arg19[%c0_69, %c0_70, %c0_71] : memref<3x1x32xf32, #tpu.memory_space<vmem>>, vector<1x1x32xf32>
    %92 = vector.shape_cast %91 : vector<1x1x32xf32> to vector<1x32xf32>
    %93 = vector.broadcast %92 : vector<1x32xf32> to vector<48x32xf32>
    %94 = arith.addf %90, %93 : vector<48x32xf32>
    %cst_72 = arith.constant 5.000000e-01 : f32
    %95 = vector.broadcast %cst_72 : f32 to vector<48x32xf32>
    %96 = arith.mulf %95, %94 : vector<48x32xf32>
    %cst_73 = arith.constant 1.400000e+01 : f32
    %97 = vector.broadcast %cst_73 : f32 to vector<48x32xf32>
    %98 = arith.minimumf %96, %97 : vector<48x32xf32>
    %cst_74 = arith.constant 1.400000e+01 : f32
    %99 = vector.broadcast %cst_74 : f32 to vector<48x32xf32>
    %100 = arith.cmpf ogt, %96, %99 : vector<48x32xf32>
    %101 = math.exp %98 : vector<48x32xf32>
    %cst_75 = arith.constant 1.000000e+00 : f32
    %102 = vector.broadcast %cst_75 : f32 to vector<48x32xf32>
    %103 = arith.addf %102, %101 : vector<48x32xf32>
    %104 = math.log %103 : vector<48x32xf32>
    %cst_76 = arith.constant 2.000000e+00 : f32
    %105 = vector.broadcast %cst_76 : f32 to vector<48x32xf32>
    %106 = arith.mulf %105, %104 : vector<48x32xf32>
    %107 = arith.select %100, %94, %106 : vector<48x32xi1>, vector<48x32xf32>
    %c1 = arith.constant 1 : index
    %c0_77 = arith.constant 0 : index
    %c0_78 = arith.constant 0 : index
    %108 = vector.load %arg6[%c1, %c0_77, %c0_78] : memref<3x32x32xf32, #tpu.memory_space<vmem>>, vector<1x32x32xf32>
    %109 = vector.shape_cast %108 : vector<1x32x32xf32> to vector<32x32xf32>
    %cst_79 = arith.constant dense<0.000000e+00> : vector<16x32xf32>
    %110 = tpu.matmul %87, %109, %cst_79 {dimension_numbers = #tpu.dot_dimension_numbers<[1], [0], [0], [1], [0, 0, 1, 1], [], []>} : vector<16x32xf32>, vector<32x32xf32>, vector<16x32xf32> -> vector<16x32xf32>
    %c1_80 = arith.constant 1 : index
    %c0_81 = arith.constant 0 : index
    %c0_82 = arith.constant 0 : index
    %111 = vector.load %arg7[%c1_80, %c0_81, %c0_82] : memref<3x1x32xf32, #tpu.memory_space<vmem>>, vector<1x1x32xf32>
    %112 = vector.shape_cast %111 : vector<1x1x32xf32> to vector<1x32xf32>
    %113 = vector.broadcast %112 : vector<1x32xf32> to vector<16x32xf32>
    %114 = arith.addf %110, %113 : vector<16x32xf32>
    %c1_83 = arith.constant 1 : index
    %c0_84 = arith.constant 0 : index
    %c0_85 = arith.constant 0 : index
    %115 = vector.load %arg8[%c1_83, %c0_84, %c0_85] : memref<3x32x32xf32, #tpu.memory_space<vmem>>, vector<1x32x32xf32>
    %116 = vector.shape_cast %115 : vector<1x32x32xf32> to vector<32x32xf32>
    %cst_86 = arith.constant dense<0.000000e+00> : vector<48x32xf32>
    %117 = tpu.matmul %8, %116, %cst_86 {dimension_numbers = #tpu.dot_dimension_numbers<[1], [0], [0], [1], [0, 0, 1, 1], [], []>} : vector<48x32xf32>, vector<32x32xf32>, vector<48x32xf32> -> vector<48x32xf32>
    %c1_87 = arith.constant 1 : index
    %c0_88 = arith.constant 0 : index
    %c0_89 = arith.constant 0 : index
    %118 = vector.load %arg9[%c1_87, %c0_88, %c0_89] : memref<3x1x32xf32, #tpu.memory_space<vmem>>, vector<1x1x32xf32>
    %119 = vector.shape_cast %118 : vector<1x1x32xf32> to vector<1x32xf32>
    %120 = vector.broadcast %119 : vector<1x32xf32> to vector<48x32xf32>
    %121 = arith.addf %117, %120 : vector<48x32xf32>
    %cst_90 = arith.constant 5.000000e-01 : f32
    %122 = vector.broadcast %cst_90 : f32 to vector<48x32xf32>
    %123 = arith.mulf %122, %121 : vector<48x32xf32>
    %cst_91 = arith.constant 1.400000e+01 : f32
    %124 = vector.broadcast %cst_91 : f32 to vector<48x32xf32>
    %125 = arith.minimumf %123, %124 : vector<48x32xf32>
    %cst_92 = arith.constant 1.400000e+01 : f32
    %126 = vector.broadcast %cst_92 : f32 to vector<48x32xf32>
    %127 = arith.cmpf ogt, %123, %126 : vector<48x32xf32>
    %128 = math.exp %125 : vector<48x32xf32>
    %cst_93 = arith.constant 1.000000e+00 : f32
    %129 = vector.broadcast %cst_93 : f32 to vector<48x32xf32>
    %130 = arith.addf %129, %128 : vector<48x32xf32>
    %131 = math.log %130 : vector<48x32xf32>
    %cst_94 = arith.constant 2.000000e+00 : f32
    %132 = vector.broadcast %cst_94 : f32 to vector<48x32xf32>
    %133 = arith.mulf %132, %131 : vector<48x32xf32>
    %134 = arith.select %127, %121, %133 : vector<48x32xi1>, vector<48x32xf32>
    %c1_95 = arith.constant 1 : index
    %c0_96 = arith.constant 0 : index
    %c0_97 = arith.constant 0 : index
    %135 = vector.load %arg10[%c1_95, %c0_96, %c0_97] : memref<3x32x32xf32, #tpu.memory_space<vmem>>, vector<1x32x32xf32>
    %136 = vector.shape_cast %135 : vector<1x32x32xf32> to vector<32x32xf32>
    %cst_98 = arith.constant dense<0.000000e+00> : vector<48x32xf32>
    %137 = tpu.matmul %134, %136, %cst_98 {dimension_numbers = #tpu.dot_dimension_numbers<[1], [0], [0], [1], [0, 0, 1, 1], [], []>} : vector<48x32xf32>, vector<32x32xf32>, vector<48x32xf32> -> vector<48x32xf32>
    %c1_99 = arith.constant 1 : index
    %c0_100 = arith.constant 0 : index
    %c0_101 = arith.constant 0 : index
    %138 = vector.load %arg11[%c1_99, %c0_100, %c0_101] : memref<3x1x32xf32, #tpu.memory_space<vmem>>, vector<1x1x32xf32>
    %139 = vector.shape_cast %138 : vector<1x1x32xf32> to vector<1x32xf32>
    %140 = vector.broadcast %139 : vector<1x32xf32> to vector<48x32xf32>
    %141 = arith.addf %137, %140 : vector<48x32xf32>
    %c1_102 = arith.constant 1 : index
    %c0_103 = arith.constant 0 : index
    %c0_104 = arith.constant 0 : index
    %142 = vector.load %arg12[%c1_102, %c0_103, %c0_104] : memref<3x32x32xf32, #tpu.memory_space<vmem>>, vector<1x32x32xf32>
    %143 = vector.shape_cast %142 : vector<1x32x32xf32> to vector<32x32xf32>
    %cst_105 = arith.constant dense<0.000000e+00> : vector<48x32xf32>
    %144 = tpu.matmul %107, %143, %cst_105 {dimension_numbers = #tpu.dot_dimension_numbers<[1], [0], [0], [1], [0, 0, 1, 1], [], []>} : vector<48x32xf32>, vector<32x32xf32>, vector<48x32xf32> -> vector<48x32xf32>
    %c1_106 = arith.constant 1 : index
    %c0_107 = arith.constant 0 : index
    %c0_108 = arith.constant 0 : index
    %145 = vector.load %arg13[%c1_106, %c0_107, %c0_108] : memref<3x1x32xf32, #tpu.memory_space<vmem>>, vector<1x1x32xf32>
    %146 = vector.shape_cast %145 : vector<1x1x32xf32> to vector<1x32xf32>
    %147 = vector.broadcast %146 : vector<1x32xf32> to vector<48x32xf32>
    %148 = arith.addf %144, %147 : vector<48x32xf32>
    %149 = arith.truncf %114 : vector<16x32xf32> to vector<16x32xbf16>
    %cst_109 = arith.constant dense<0.000000e+00> : vector<48x32xf32>
    %150 = tpu.matmul %9, %149, %cst_109 {dimension_numbers = #tpu.dot_dimension_numbers<[1], [0], [0], [1], [0, 0, 1, 1], [], []>} : vector<48x16xbf16>, vector<16x32xbf16>, vector<48x32xf32> -> vector<48x32xf32>
    %151 = arith.mulf %150, %141 : vector<48x32xf32>
    %152 = arith.addf %151, %148 : vector<48x32xf32>
    %153 = arith.truncf %152 : vector<48x32xf32> to vector<48x32xbf16>
    %cst_110 = arith.constant dense<0.000000e+00> : vector<16x32xf32>
    %154 = tpu.matmul %10, %153, %cst_110 {dimension_numbers = #tpu.dot_dimension_numbers<[1], [0], [0], [1], [0, 0, 1, 1], [], []>} : vector<16x48xbf16>, vector<48x32xbf16>, vector<16x32xf32> -> vector<16x32xf32>
    %c1_111 = arith.constant 1 : index
    %c0_112 = arith.constant 0 : index
    %c0_113 = arith.constant 0 : index
    %155 = vector.load %arg14[%c1_111, %c0_112, %c0_113] : memref<3x32x32xf32, #tpu.memory_space<vmem>>, vector<1x32x32xf32>
    %156 = vector.shape_cast %155 : vector<1x32x32xf32> to vector<32x32xf32>
    %cst_114 = arith.constant dense<0.000000e+00> : vector<16x32xf32>
    %157 = tpu.matmul %154, %156, %cst_114 {dimension_numbers = #tpu.dot_dimension_numbers<[1], [0], [0], [1], [0, 0, 1, 1], [], []>} : vector<16x32xf32>, vector<32x32xf32>, vector<16x32xf32> -> vector<16x32xf32>
    %c1_115 = arith.constant 1 : index
    %c0_116 = arith.constant 0 : index
    %c0_117 = arith.constant 0 : index
    %158 = vector.load %arg15[%c1_115, %c0_116, %c0_117] : memref<3x1x32xf32, #tpu.memory_space<vmem>>, vector<1x1x32xf32>
    %159 = vector.shape_cast %158 : vector<1x1x32xf32> to vector<1x32xf32>
    %160 = vector.broadcast %159 : vector<1x32xf32> to vector<16x32xf32>
    %161 = arith.addf %157, %160 : vector<16x32xf32>
    %cst_118 = arith.constant 5.000000e-01 : f32
    %162 = vector.broadcast %cst_118 : f32 to vector<16x32xf32>
    %163 = arith.mulf %162, %161 : vector<16x32xf32>
    %cst_119 = arith.constant 1.400000e+01 : f32
    %164 = vector.broadcast %cst_119 : f32 to vector<16x32xf32>
    %165 = arith.minimumf %163, %164 : vector<16x32xf32>
    %cst_120 = arith.constant 1.400000e+01 : f32
    %166 = vector.broadcast %cst_120 : f32 to vector<16x32xf32>
    %167 = arith.cmpf ogt, %163, %166 : vector<16x32xf32>
    %168 = math.exp %165 : vector<16x32xf32>
    %cst_121 = arith.constant 1.000000e+00 : f32
    %169 = vector.broadcast %cst_121 : f32 to vector<16x32xf32>
    %170 = arith.addf %169, %168 : vector<16x32xf32>
    %171 = math.log %170 : vector<16x32xf32>
    %cst_122 = arith.constant 2.000000e+00 : f32
    %172 = vector.broadcast %cst_122 : f32 to vector<16x32xf32>
    %173 = arith.mulf %172, %171 : vector<16x32xf32>
    %174 = arith.select %167, %161, %173 : vector<16x32xi1>, vector<16x32xf32>
    %c1_123 = arith.constant 1 : index
    %c0_124 = arith.constant 0 : index
    %c0_125 = arith.constant 0 : index
    %175 = vector.load %arg16[%c1_123, %c0_124, %c0_125] : memref<3x32x32xf32, #tpu.memory_space<vmem>>, vector<1x32x32xf32>
    %176 = vector.shape_cast %175 : vector<1x32x32xf32> to vector<32x32xf32>
    %cst_126 = arith.constant dense<0.000000e+00> : vector<16x32xf32>
    %177 = tpu.matmul %174, %176, %cst_126 {dimension_numbers = #tpu.dot_dimension_numbers<[1], [0], [0], [1], [0, 0, 1, 1], [], []>} : vector<16x32xf32>, vector<32x32xf32>, vector<16x32xf32> -> vector<16x32xf32>
    %c1_127 = arith.constant 1 : index
    %c0_128 = arith.constant 0 : index
    %c0_129 = arith.constant 0 : index
    %178 = vector.load %arg17[%c1_127, %c0_128, %c0_129] : memref<3x1x32xf32, #tpu.memory_space<vmem>>, vector<1x1x32xf32>
    %179 = vector.shape_cast %178 : vector<1x1x32xf32> to vector<1x32xf32>
    %180 = vector.broadcast %179 : vector<1x32xf32> to vector<16x32xf32>
    %181 = arith.addf %177, %180 : vector<16x32xf32>
    %182 = arith.addf %87, %181 : vector<16x32xf32>
    %c1_130 = arith.constant 1 : index
    %c0_131 = arith.constant 0 : index
    %c0_132 = arith.constant 0 : index
    %183 = vector.load %arg18[%c1_130, %c0_131, %c0_132] : memref<3x32x32xf32, #tpu.memory_space<vmem>>, vector<1x32x32xf32>
    %184 = vector.shape_cast %183 : vector<1x32x32xf32> to vector<32x32xf32>
    %cst_133 = arith.constant dense<0.000000e+00> : vector<48x32xf32>
    %185 = tpu.matmul %148, %184, %cst_133 {dimension_numbers = #tpu.dot_dimension_numbers<[1], [0], [0], [1], [0, 0, 1, 1], [], []>} : vector<48x32xf32>, vector<32x32xf32>, vector<48x32xf32> -> vector<48x32xf32>
    %c1_134 = arith.constant 1 : index
    %c0_135 = arith.constant 0 : index
    %c0_136 = arith.constant 0 : index
    %186 = vector.load %arg19[%c1_134, %c0_135, %c0_136] : memref<3x1x32xf32, #tpu.memory_space<vmem>>, vector<1x1x32xf32>
    %187 = vector.shape_cast %186 : vector<1x1x32xf32> to vector<1x32xf32>
    %188 = vector.broadcast %187 : vector<1x32xf32> to vector<48x32xf32>
    %189 = arith.addf %185, %188 : vector<48x32xf32>
    %cst_137 = arith.constant 5.000000e-01 : f32
    %190 = vector.broadcast %cst_137 : f32 to vector<48x32xf32>
    %191 = arith.mulf %190, %189 : vector<48x32xf32>
    %cst_138 = arith.constant 1.400000e+01 : f32
    %192 = vector.broadcast %cst_138 : f32 to vector<48x32xf32>
    %193 = arith.minimumf %191, %192 : vector<48x32xf32>
    %cst_139 = arith.constant 1.400000e+01 : f32
    %194 = vector.broadcast %cst_139 : f32 to vector<48x32xf32>
    %195 = arith.cmpf ogt, %191, %194 : vector<48x32xf32>
    %196 = math.exp %193 : vector<48x32xf32>
    %cst_140 = arith.constant 1.000000e+00 : f32
    %197 = vector.broadcast %cst_140 : f32 to vector<48x32xf32>
    %198 = arith.addf %197, %196 : vector<48x32xf32>
    %199 = math.log %198 : vector<48x32xf32>
    %cst_141 = arith.constant 2.000000e+00 : f32
    %200 = vector.broadcast %cst_141 : f32 to vector<48x32xf32>
    %201 = arith.mulf %200, %199 : vector<48x32xf32>
    %202 = arith.select %195, %189, %201 : vector<48x32xi1>, vector<48x32xf32>
    %c2 = arith.constant 2 : index
    %c0_142 = arith.constant 0 : index
    %c0_143 = arith.constant 0 : index
    %203 = vector.load %arg6[%c2, %c0_142, %c0_143] : memref<3x32x32xf32, #tpu.memory_space<vmem>>, vector<1x32x32xf32>
    %204 = vector.shape_cast %203 : vector<1x32x32xf32> to vector<32x32xf32>
    %cst_144 = arith.constant dense<0.000000e+00> : vector<16x32xf32>
    %205 = tpu.matmul %182, %204, %cst_144 {dimension_numbers = #tpu.dot_dimension_numbers<[1], [0], [0], [1], [0, 0, 1, 1], [], []>} : vector<16x32xf32>, vector<32x32xf32>, vector<16x32xf32> -> vector<16x32xf32>
    %c2_145 = arith.constant 2 : index
    %c0_146 = arith.constant 0 : index
    %c0_147 = arith.constant 0 : index
    %206 = vector.load %arg7[%c2_145, %c0_146, %c0_147] : memref<3x1x32xf32, #tpu.memory_space<vmem>>, vector<1x1x32xf32>
    %207 = vector.shape_cast %206 : vector<1x1x32xf32> to vector<1x32xf32>
    %208 = vector.broadcast %207 : vector<1x32xf32> to vector<16x32xf32>
    %209 = arith.addf %205, %208 : vector<16x32xf32>
    %c2_148 = arith.constant 2 : index
    %c0_149 = arith.constant 0 : index
    %c0_150 = arith.constant 0 : index
    %210 = vector.load %arg8[%c2_148, %c0_149, %c0_150] : memref<3x32x32xf32, #tpu.memory_space<vmem>>, vector<1x32x32xf32>
    %211 = vector.shape_cast %210 : vector<1x32x32xf32> to vector<32x32xf32>
    %cst_151 = arith.constant dense<0.000000e+00> : vector<48x32xf32>
    %212 = tpu.matmul %8, %211, %cst_151 {dimension_numbers = #tpu.dot_dimension_numbers<[1], [0], [0], [1], [0, 0, 1, 1], [], []>} : vector<48x32xf32>, vector<32x32xf32>, vector<48x32xf32> -> vector<48x32xf32>
    %c2_152 = arith.constant 2 : index
    %c0_153 = arith.constant 0 : index
    %c0_154 = arith.constant 0 : index
    %213 = vector.load %arg9[%c2_152, %c0_153, %c0_154] : memref<3x1x32xf32, #tpu.memory_space<vmem>>, vector<1x1x32xf32>
    %214 = vector.shape_cast %213 : vector<1x1x32xf32> to vector<1x32xf32>
    %215 = vector.broadcast %214 : vector<1x32xf32> to vector<48x32xf32>
    %216 = arith.addf %212, %215 : vector<48x32xf32>
    %cst_155 = arith.constant 5.000000e-01 : f32
    %217 = vector.broadcast %cst_155 : f32 to vector<48x32xf32>
    %218 = arith.mulf %217, %216 : vector<48x32xf32>
    %cst_156 = arith.constant 1.400000e+01 : f32
    %219 = vector.broadcast %cst_156 : f32 to vector<48x32xf32>
    %220 = arith.minimumf %218, %219 : vector<48x32xf32>
    %cst_157 = arith.constant 1.400000e+01 : f32
    %221 = vector.broadcast %cst_157 : f32 to vector<48x32xf32>
    %222 = arith.cmpf ogt, %218, %221 : vector<48x32xf32>
    %223 = math.exp %220 : vector<48x32xf32>
    %cst_158 = arith.constant 1.000000e+00 : f32
    %224 = vector.broadcast %cst_158 : f32 to vector<48x32xf32>
    %225 = arith.addf %224, %223 : vector<48x32xf32>
    %226 = math.log %225 : vector<48x32xf32>
    %cst_159 = arith.constant 2.000000e+00 : f32
    %227 = vector.broadcast %cst_159 : f32 to vector<48x32xf32>
    %228 = arith.mulf %227, %226 : vector<48x32xf32>
    %229 = arith.select %222, %216, %228 : vector<48x32xi1>, vector<48x32xf32>
    %c2_160 = arith.constant 2 : index
    %c0_161 = arith.constant 0 : index
    %c0_162 = arith.constant 0 : index
    %230 = vector.load %arg10[%c2_160, %c0_161, %c0_162] : memref<3x32x32xf32, #tpu.memory_space<vmem>>, vector<1x32x32xf32>
    %231 = vector.shape_cast %230 : vector<1x32x32xf32> to vector<32x32xf32>
    %cst_163 = arith.constant dense<0.000000e+00> : vector<48x32xf32>
    %232 = tpu.matmul %229, %231, %cst_163 {dimension_numbers = #tpu.dot_dimension_numbers<[1], [0], [0], [1], [0, 0, 1, 1], [], []>} : vector<48x32xf32>, vector<32x32xf32>, vector<48x32xf32> -> vector<48x32xf32>
    %c2_164 = arith.constant 2 : index
    %c0_165 = arith.constant 0 : index
    %c0_166 = arith.constant 0 : index
    %233 = vector.load %arg11[%c2_164, %c0_165, %c0_166] : memref<3x1x32xf32, #tpu.memory_space<vmem>>, vector<1x1x32xf32>
    %234 = vector.shape_cast %233 : vector<1x1x32xf32> to vector<1x32xf32>
    %235 = vector.broadcast %234 : vector<1x32xf32> to vector<48x32xf32>
    %236 = arith.addf %232, %235 : vector<48x32xf32>
    %c2_167 = arith.constant 2 : index
    %c0_168 = arith.constant 0 : index
    %c0_169 = arith.constant 0 : index
    %237 = vector.load %arg12[%c2_167, %c0_168, %c0_169] : memref<3x32x32xf32, #tpu.memory_space<vmem>>, vector<1x32x32xf32>
    %238 = vector.shape_cast %237 : vector<1x32x32xf32> to vector<32x32xf32>
    %cst_170 = arith.constant dense<0.000000e+00> : vector<48x32xf32>
    %239 = tpu.matmul %202, %238, %cst_170 {dimension_numbers = #tpu.dot_dimension_numbers<[1], [0], [0], [1], [0, 0, 1, 1], [], []>} : vector<48x32xf32>, vector<32x32xf32>, vector<48x32xf32> -> vector<48x32xf32>
    %c2_171 = arith.constant 2 : index
    %c0_172 = arith.constant 0 : index
    %c0_173 = arith.constant 0 : index
    %240 = vector.load %arg13[%c2_171, %c0_172, %c0_173] : memref<3x1x32xf32, #tpu.memory_space<vmem>>, vector<1x1x32xf32>
    %241 = vector.shape_cast %240 : vector<1x1x32xf32> to vector<1x32xf32>
    %242 = vector.broadcast %241 : vector<1x32xf32> to vector<48x32xf32>
    %243 = arith.addf %239, %242 : vector<48x32xf32>
    %244 = arith.truncf %209 : vector<16x32xf32> to vector<16x32xbf16>
    %cst_174 = arith.constant dense<0.000000e+00> : vector<48x32xf32>
    %245 = tpu.matmul %9, %244, %cst_174 {dimension_numbers = #tpu.dot_dimension_numbers<[1], [0], [0], [1], [0, 0, 1, 1], [], []>} : vector<48x16xbf16>, vector<16x32xbf16>, vector<48x32xf32> -> vector<48x32xf32>
    %246 = arith.mulf %245, %236 : vector<48x32xf32>
    %247 = arith.addf %246, %243 : vector<48x32xf32>
    %248 = arith.truncf %247 : vector<48x32xf32> to vector<48x32xbf16>
    %cst_175 = arith.constant dense<0.000000e+00> : vector<16x32xf32>
    %249 = tpu.matmul %10, %248, %cst_175 {dimension_numbers = #tpu.dot_dimension_numbers<[1], [0], [0], [1], [0, 0, 1, 1], [], []>} : vector<16x48xbf16>, vector<48x32xbf16>, vector<16x32xf32> -> vector<16x32xf32>
    %c2_176 = arith.constant 2 : index
    %c0_177 = arith.constant 0 : index
    %c0_178 = arith.constant 0 : index
    %250 = vector.load %arg14[%c2_176, %c0_177, %c0_178] : memref<3x32x32xf32, #tpu.memory_space<vmem>>, vector<1x32x32xf32>
    %251 = vector.shape_cast %250 : vector<1x32x32xf32> to vector<32x32xf32>
    %cst_179 = arith.constant dense<0.000000e+00> : vector<16x32xf32>
    %252 = tpu.matmul %249, %251, %cst_179 {dimension_numbers = #tpu.dot_dimension_numbers<[1], [0], [0], [1], [0, 0, 1, 1], [], []>} : vector<16x32xf32>, vector<32x32xf32>, vector<16x32xf32> -> vector<16x32xf32>
    %c2_180 = arith.constant 2 : index
    %c0_181 = arith.constant 0 : index
    %c0_182 = arith.constant 0 : index
    %253 = vector.load %arg15[%c2_180, %c0_181, %c0_182] : memref<3x1x32xf32, #tpu.memory_space<vmem>>, vector<1x1x32xf32>
    %254 = vector.shape_cast %253 : vector<1x1x32xf32> to vector<1x32xf32>
    %255 = vector.broadcast %254 : vector<1x32xf32> to vector<16x32xf32>
    %256 = arith.addf %252, %255 : vector<16x32xf32>
    %cst_183 = arith.constant 5.000000e-01 : f32
    %257 = vector.broadcast %cst_183 : f32 to vector<16x32xf32>
    %258 = arith.mulf %257, %256 : vector<16x32xf32>
    %cst_184 = arith.constant 1.400000e+01 : f32
    %259 = vector.broadcast %cst_184 : f32 to vector<16x32xf32>
    %260 = arith.minimumf %258, %259 : vector<16x32xf32>
    %cst_185 = arith.constant 1.400000e+01 : f32
    %261 = vector.broadcast %cst_185 : f32 to vector<16x32xf32>
    %262 = arith.cmpf ogt, %258, %261 : vector<16x32xf32>
    %263 = math.exp %260 : vector<16x32xf32>
    %cst_186 = arith.constant 1.000000e+00 : f32
    %264 = vector.broadcast %cst_186 : f32 to vector<16x32xf32>
    %265 = arith.addf %264, %263 : vector<16x32xf32>
    %266 = math.log %265 : vector<16x32xf32>
    %cst_187 = arith.constant 2.000000e+00 : f32
    %267 = vector.broadcast %cst_187 : f32 to vector<16x32xf32>
    %268 = arith.mulf %267, %266 : vector<16x32xf32>
    %269 = arith.select %262, %256, %268 : vector<16x32xi1>, vector<16x32xf32>
    %c2_188 = arith.constant 2 : index
    %c0_189 = arith.constant 0 : index
    %c0_190 = arith.constant 0 : index
    %270 = vector.load %arg16[%c2_188, %c0_189, %c0_190] : memref<3x32x32xf32, #tpu.memory_space<vmem>>, vector<1x32x32xf32>
    %271 = vector.shape_cast %270 : vector<1x32x32xf32> to vector<32x32xf32>
    %cst_191 = arith.constant dense<0.000000e+00> : vector<16x32xf32>
    %272 = tpu.matmul %269, %271, %cst_191 {dimension_numbers = #tpu.dot_dimension_numbers<[1], [0], [0], [1], [0, 0, 1, 1], [], []>} : vector<16x32xf32>, vector<32x32xf32>, vector<16x32xf32> -> vector<16x32xf32>
    %c2_192 = arith.constant 2 : index
    %c0_193 = arith.constant 0 : index
    %c0_194 = arith.constant 0 : index
    %273 = vector.load %arg17[%c2_192, %c0_193, %c0_194] : memref<3x1x32xf32, #tpu.memory_space<vmem>>, vector<1x1x32xf32>
    %274 = vector.shape_cast %273 : vector<1x1x32xf32> to vector<1x32xf32>
    %275 = vector.broadcast %274 : vector<1x32xf32> to vector<16x32xf32>
    %276 = arith.addf %272, %275 : vector<16x32xf32>
    %277 = arith.addf %182, %276 : vector<16x32xf32>
    %278 = tpu.concatenate %11, %87, %182, %277 in 1 : vector<16x32xf32>, vector<16x32xf32>, vector<16x32xf32>, vector<16x32xf32> -> vector<16x128xf32>
    %c0_195 = arith.constant 0 : index
    %c0_196 = arith.constant 0 : index
    %279 = vector.load %arg20[%c0_195, %c0_196] : memref<16x128xf32, #tpu.memory_space<vmem>>, vector<16x128xf32>
    tpu.vector_store %arg20[%c0_195, %c0_196], %278 {strides = array<i32>} : memref<16x128xf32, #tpu.memory_space<vmem>>, vector<16x128xf32>,
    return
  }
}

</mosaic_0001>

<bundles_post_ra>
// kernel: tpu_custom_call.1
= control target key start
LH: loop header
LB: loop body
LE: loop exit
PB: predicated region body
PF: predicated region fallthrough
CT: control target
= control target key end

     0   :  { %s5386_s0 = inlined_call_operand.hbm [shape: f32[16,32], index: 0, kind: input, shape index: {}]   ;;  %s5387_s1 = inlined_call_operand.vmem [shape: f32[48,32], index: 1, kind: input, shape index: {}]   ;;  %s5388_s2 = inlined_call_operand.vmem [shape: f32[48,1], index: 2, kind: input, shape index: {}]   ;;  %s5389_s3 = inlined_call_operand.hbm [shape: f32[1,32], index: 3, kind: input, shape index: {}]   ;;  %s5390_s4 = inlined_call_operand.vmem [shape: bf16[48,16], index: 4, kind: input, shape index: {}]   ;;  %s5391_s5 = inlined_call_operand.hbm [shape: bf16[16,48], index: 5, kind: input, shape index: {}]   ;;  %s5392_s6 = inlined_call_operand.vmem [shape: f32[3,32,32], index: 6, kind: input, shape index: {}]   ;;  %s5393_s7 = inlined_call_operand.hbm [shape: f32[3,1,32], index: 7, kind: input, shape index: {}]   ;;  %s5394_s8 = inlined_call_operand.hbm [shape: f32[3,32,32], index: 8, kind: input, shape index: {}]   ;;  %s5395_s9 = inlined_call_operand.hbm [shape: f32[3,1,32], index: 9, kind: input, shape index: {}]   ;;  %s5396_s10 = inlined_call_operand.hbm [shape: f32[3,32,32], index: 10, kind: input, shape index: {}]   ;;  %s5397_s11 = inlined_call_operand.hbm [shape: f32[3,1,32], index: 11, kind: input, shape index: {}]   ;;  %s5398_s12 = inlined_call_operand.hbm [shape: f32[3,32,32], index: 12, kind: input, shape index: {}]   ;;  %s5399_s13 = inlined_call_operand.hbm [shape: f32[3,1,32], index: 13, kind: input, shape index: {}]   ;;  %s5400_s14 = inlined_call_operand.hbm [shape: f32[3,32,32], index: 14, kind: input, shape index: {}]   ;;  %s5401_s15 = inlined_call_operand.hbm [shape: f32[3,1,32], index: 15, kind: input, shape index: {}]   ;;  %s5402_s16 = inlined_call_operand.hbm [shape: f32[3,32,32], index: 16, kind: input, shape index: {}]   ;;  %s5403_s17 = inlined_call_operand.hbm [shape: f32[3,1,32], index: 17, kind: input, shape index: {}]   ;;  %s5404_s18 = inlined_call_operand.vmem [shape: f32[3,32,32], index: 18, kind: input, shape index: {}]   ;;  %s5405_s19 = inlined_call_operand.hbm [shape: f32[3,1,32], index: 19, kind: input, shape index: {}]   ;;  %s5406_s20 = inlined_call_operand.hbm [shape: f32[16,128], index: 20, kind: output, shape index: {}]  }
   0x1   :  { %5410 = sst [smem:[#allocation36_spill]] %s5386_s0 }
   0x2   :  { %5411 = sst [smem:[#allocation37_spill]] %s5387_s1 }
   0x3   :  { %5412 = sst [smem:[#allocation38_spill]] %s5388_s2 }
   0x4   :  { %5413 = sst [smem:[#allocation39_spill]] %s5389_s3 }
   0x5   :  { %5414 = sst [smem:[#allocation40_spill]] %s5390_s4 }
   0x6   :  { %25 = vsyncpa [#allocation3], 0 }
   0x7   :  { %26 = vsyncpa [#allocation6], 0 }
   0x8   :  { %27 = vsyncpa [#allocation9], 0 }
   0x9   :  { %28 = vsyncpa [#allocation12], 0 }
   0xa   :  { %29 = vsyncpa [#allocation15], 0 }
   0xb   :  { %30 = vsyncpa [#allocation18], 0 }
   0xc   :  { %31 = vsyncpa [#allocation21], 0 }
   0xd   :  { %32 = vsyncpa [#allocation24], 0 }
   0xe   :  { %33 = vsyncpa [#allocation4], 0  ;;  %s4550_s1 = smov [#allocation5]   ;;  %s4551_s23 = smov [#allocation8]  }
   0xf   :  { %s56_s22 = sshll.u32 %s4550_s1, 4  ;;  %s81_s24 = sshll.u32 %s4551_s23, 4  ;;  %s57_s22 = int_to_ptr.vmem [resolvable:$true] %s56_s22  ;;  %s82_s24 = int_to_ptr.vmem [resolvable:$true] %s81_s24 }
  0x10   :  { %s4220_s2 = scalar_lea.vmem %s57_s22, 16  ;;  %s4224_s25 = scalar_lea.vmem %s57_s22, 32 }
  0x11   :  { %p4221_p0 = scmp.ne.s32.totalorder %s57_s22, %s4220_s2  ;;  %p4225_p1 = scmp.lt.s32.totalorder %s57_s22, %s57_s22 }
  0x12   :  { %p4226_p2 = scmp.lt.s32.totalorder %s4224_s25, %s4220_s2 }
  0x14   :  { %p4227_p3 = por %p4226_p2, %p4225_p1 }
  0x16   :  { %p4228_p4 = pnand %p4227_p3, %p4221_p0 }
  0x18   :  { %4231 = shalt.err (!%p4228_p4)
}
  0x19   :  { %s5415_s27 = sld [smem:[#allocation39_spill]]  ;;  %s4240_s28 = scalar_lea.vmem %s82_s24, 48 }
  0x1a   :  { %p4241_p5 = scmp.ne.s32.totalorder %s82_s24, %s4240_s28  ;;  %s4244_s4 = scalar_lea.vmem %s82_s24, 64 }
  0x1b   :  { %p4245_p6 = scmp.lt.s32.totalorder %s82_s24, %s82_s24  ;;  %p4246_p7 = scmp.lt.s32.totalorder %s4244_s4, %s4240_s28 }
  0x1d   :  { %p4247_p8 = por %p4246_p7, %p4245_p6 }
  0x1f   :  { %59 = dma.hbm_to_vmem [thread:$0]  %s5415_s27, 16, %s57_s22, [#allocation6]  }
  0x20   :  { %p4248_p9 = pnand %p4247_p8, %p4241_p5 }
  0x22   :  { %4251 = shalt.err (!%p4248_p9)
}
  0x23   :  { %s4552_s29 = smov 16   ;;  %s4553_s30 = smov 1  }
  0x24   :  { %87 = dma.hbm_to_vmem [thread:$0]  %s5393_s7, 48, %s82_s24, [#allocation9], %s4552_s29, %s4552_s29, %s4553_s30  }
  0x25   :  { %s4554_s1 = smov [#allocation11]   ;;  %s4555_s22 = smov [#allocation14]  }
  0x26   :  { %s105_s23 = sshll.u32 %s4554_s1, 4  ;;  %s129_s2 = sshll.u32 %s4555_s22, 4  ;;  %s106_s23 = int_to_ptr.vmem [resolvable:$true] %s105_s23  ;;  %s130_s2 = int_to_ptr.vmem [resolvable:$true] %s129_s2 }
  0x27   :  { %s4260_s25 = scalar_lea.vmem %s106_s23, 48  ;;  %s4264_s3 = scalar_lea.vmem %s106_s23, 64 }
  0x28   :  { %p4261_p10 = scmp.ne.s32.totalorder %s106_s23, %s4260_s25  ;;  %p4265_p11 = scmp.lt.s32.totalorder %s106_s23, %s106_s23 }
  0x29   :  { %p4266_p12 = scmp.lt.s32.totalorder %s4264_s3, %s4260_s25 }
  0x2b   :  { %p4267_p13 = por %p4266_p12, %p4265_p11 }
  0x2d   :  { %p4268_p0 = pnand %p4267_p13, %p4261_p10 }
  0x2f   :  { %4271 = shalt.err (!%p4268_p0)
}
  0x30   :  { %111 = dma.hbm_to_vmem [thread:$0]  %s5395_s9, 48, %s106_s23, [#allocation12], %s4552_s29, %s4552_s29, %s4553_s30  }
  0x31   :  { %s4280_s7 = scalar_lea.vmem %s130_s2, 48  ;;  %s4284_s24 = scalar_lea.vmem %s130_s2, 64 }
  0x32   :  { %p4281_p1 = scmp.ne.s32.totalorder %s130_s2, %s4280_s7  ;;  %p4285_p2 = scmp.lt.s32.totalorder %s130_s2, %s130_s2 }
  0x33   :  { %p4286_p3 = scmp.lt.s32.totalorder %s4284_s24, %s4280_s7 }
  0x35   :  { %p4287_p4 = por %p4286_p3, %p4285_p2 }
  0x37   :  { %p4288_p5 = pnand %p4287_p4, %p4281_p1 }
  0x39   :  { %4291 = shalt.err (!%p4288_p5)
}
  0x3a   :  { %135 = dma.hbm_to_vmem [thread:$0]  %s5397_s11, 48, %s130_s2, [#allocation15], %s4552_s29, %s4552_s29, %s4553_s30  }
  0x3b   :  { %s4556_s0 = smov [#allocation17]   ;;  %s4557_s1 = smov [#allocation20]  }
  0x3c   :  { %s153_s21 = sshll.u32 %s4556_s0, 4  ;;  %s177_s22 = sshll.u32 %s4557_s1, 4  ;;  %s154_s21 = int_to_ptr.vmem [resolvable:$true] %s153_s21  ;;  %s178_s22 = int_to_ptr.vmem [resolvable:$true] %s177_s22 }
  0x3d   :  { %s4300_s9 = scalar_lea.vmem %s154_s21, 48  ;;  %s4304_s23 = scalar_lea.vmem %s154_s21, 64 }
  0x3e   :  { %p4301_p6 = scmp.ne.s32.totalorder %s154_s21, %s4300_s9  ;;  %p4305_p7 = scmp.lt.s32.totalorder %s154_s21, %s154_s21 }
  0x3f   :  { %p4306_p8 = scmp.lt.s32.totalorder %s4304_s23, %s4300_s9 }
  0x41   :  { %p4307_p9 = por %p4306_p8, %p4305_p7 }
  0x43   :  { %p4308_p10 = pnand %p4307_p9, %p4301_p6 }
  0x45   :  { %4311 = shalt.err (!%p4308_p10)
}
  0x46   :  { %159 = dma.hbm_to_vmem [thread:$0]  %s5399_s13, 48, %s154_s21, [#allocation18], %s4552_s29, %s4552_s29, %s4553_s30  }
  0x47   :  { %s4320_s11 = scalar_lea.vmem %s178_s22, 48  ;;  %s4324_s2 = scalar_lea.vmem %s178_s22, 64 }
  0x48   :  { %p4321_p11 = scmp.ne.s32.totalorder %s178_s22, %s4320_s11  ;;  %p4325_p12 = scmp.lt.s32.totalorder %s178_s22, %s178_s22 }
  0x49   :  { %p4326_p13 = scmp.lt.s32.totalorder %s4324_s2, %s4320_s11 }
  0x4b   :  { %p4327_p0 = por %p4326_p13, %p4325_p12 }
  0x4d   :  { %p4328_p1 = pnand %p4327_p0, %p4321_p11 }
  0x4f   :  { %4331 = shalt.err (!%p4328_p1)
}
  0x50   :  { %183 = dma.hbm_to_vmem [thread:$0]  %s5401_s15, 48, %s178_s22, [#allocation21], %s4552_s29, %s4552_s29, %s4553_s30  }
  0x51   :  { %s4558_s7 = smov [#allocation23]   ;;  %s4559_s28 = smov [#allocation2]  }
  0x52   :  { %s201_s24 = sshll.u32 %s4558_s7, 4  ;;  %s39_s4 = sshll.u32 %s4559_s28, 4  ;;  %s202_s24 = int_to_ptr.vmem [resolvable:$true] %s201_s24  ;;  %s40_s4 = int_to_ptr.vmem [resolvable:$true] %s39_s4 }
  0x53   :  { %s4340_s13 = scalar_lea.vmem %s202_s24, 48  ;;  %s4344_s0 = scalar_lea.vmem %s202_s24, 64 }
  0x54   :  { %p4341_p2 = scmp.ne.s32.totalorder %s202_s24, %s4340_s13  ;;  %p4345_p3 = scmp.lt.s32.totalorder %s202_s24, %s202_s24 }
  0x55   :  { %p4346_p4 = scmp.lt.s32.totalorder %s4344_s0, %s4340_s13 }
  0x57   :  { %p4347_p5 = por %p4346_p4, %p4345_p3 }
  0x59   :  { %p4348_p6 = pnand %p4347_p5, %p4341_p2 }
  0x5b   :  { %4351 = shalt.err (!%p4348_p6)
}
  0x5c   :  { %207 = dma.hbm_to_vmem [thread:$0]  %s5403_s17, 48, %s202_s24, [#allocation24], %s4552_s29, %s4552_s29, %s4553_s30  }
  0x5d   :  { %s4360_s15 = scalar_lea.vmem %s40_s4, 256  ;;  %p4365_p8 = scmp.lt.s32.totalorder %s40_s4, %s40_s4 }
  0x5e   :  { %p4361_p7 = scmp.ne.s32.totalorder %s40_s4, %s4360_s15  ;;  %p4366_p9 = scmp.lt.s32.totalorder %s4360_s15, %s4360_s15 }
  0x60   :  { %p4367_p10 = por %p4366_p9, %p4365_p8 }
  0x62   :  { %p4368_p11 = pnand %p4367_p10, %p4361_p7 }
  0x64   :  { %4371 = shalt.err (!%p4368_p11)
}
  0x65   :  { %s4560_s22 = smov 128   ;;  %s4561_s9 = smov 8  }
  0x66   :  { %s5416_s3 = sld [smem:[#allocation36_spill]]  ;;  %s4562_s11 = smov [#allocation7]  }
  0x67   :  { %s67_s2 = sshll.u32 %s4562_s11, 4  ;;  %s68_s2 = int_to_ptr.vmem [resolvable:$true] %s67_s2 }
  0x68   :  { %s4380_s17 = scalar_lea.vmem %s68_s2, 128  ;;  %p4385_p13 = scmp.lt.s32.totalorder %s68_s2, %s68_s2 }
  0x69   :  { %p4381_p12 = scmp.ne.s32.totalorder %s68_s2, %s4380_s17  ;;  %p4386_p0 = scmp.lt.s32.totalorder %s4380_s17, %s4380_s17 }
  0x6b   :  { %p4387_p1 = por %p4386_p0, %p4385_p13 }
  0x6c   :  { %45 = dma.hbm_to_vmem [thread:$0]  %s5416_s3, 256, %s40_s4, [#allocation3], %s4560_s22, %s4560_s22, %s4561_s9  }
  0x6d   :  { %p4388_p2 = pnand %p4387_p1, %p4381_p12 }
  0x6f   :  { %4391 = shalt.err (!%p4388_p2)
}
  0x70   :  { %s4563_s26 = smov 64   ;;  %s4564_s27 = smov 4  }
  0x71   :  { %73 = dma.hbm_to_vmem [thread:$0]  %s5391_s5, 128, %s68_s2, [#allocation6], %s4563_s26, %s4563_s26, %s4564_s27  }
  0x72   :  { %s4565_s28 = smov [#allocation10]   ;;  %s4566_s13 = smov [#allocation13]  }
  0x73   :  { %s93_s4 = sshll.u32 %s4565_s28, 4  ;;  %s117_s0 = sshll.u32 %s4566_s13, 4  ;;  %s94_s4 = int_to_ptr.vmem [resolvable:$true] %s93_s4  ;;  %s118_s0 = int_to_ptr.vmem [resolvable:$true] %s117_s0 }
  0x74   :  { %s4400_s21 = scalar_lea.vmem %s94_s4, 1536  ;;  %p4405_p4 = scmp.lt.s32.totalorder %s94_s4, %s94_s4 }
  0x75   :  { %p4401_p3 = scmp.ne.s32.totalorder %s94_s4, %s4400_s21  ;;  %p4406_p5 = scmp.lt.s32.totalorder %s4400_s21, %s4400_s21 }
  0x77   :  { %p4407_p6 = por %p4406_p5, %p4405_p4 }
  0x79   :  { %p4408_p7 = pnand %p4407_p6, %p4401_p3 }
  0x7b   :  { %4411 = shalt.err (!%p4408_p7)
}
  0x7c   :  { %99 = dma.hbm_to_vmem [thread:$0]  %s5394_s8, 1536, %s94_s4, [#allocation9], %s4560_s22, %s4560_s22, %s4561_s9  }
  0x7d   :  { %s4420_s5 = scalar_lea.vmem %s118_s0, 1536  ;;  %p4425_p9 = scmp.lt.s32.totalorder %s118_s0, %s118_s0 }
  0x7e   :  { %p4421_p8 = scmp.ne.s32.totalorder %s118_s0, %s4420_s5  ;;  %p4426_p10 = scmp.lt.s32.totalorder %s4420_s5, %s4420_s5 }
  0x80   :  { %p4427_p11 = por %p4426_p10, %p4425_p9 }
  0x82   :  { %p4428_p12 = pnand %p4427_p11, %p4421_p8 }
  0x84   :  { %4431 = shalt.err (!%p4428_p12)
}
  0x85   :  { %123 = dma.hbm_to_vmem [thread:$0]  %s5396_s10, 1536, %s118_s0, [#allocation12], %s4560_s22, %s4560_s22, %s4561_s9  }
  0x86   :  { %s4567_s3 = smov [#allocation16]   ;;  %s4568_s2 = smov [#allocation19]  }
  0x87   :  { %s141_s11 = sshll.u32 %s4567_s3, 4  ;;  %s165_s8 = sshll.u32 %s4568_s2, 4  ;;  %s142_s11 = int_to_ptr.vmem [resolvable:$true] %s141_s11  ;;  %s166_s8 = int_to_ptr.vmem [resolvable:$true] %s165_s8 }
  0x88   :  { %s4440_s17 = scalar_lea.vmem %s142_s11, 1536  ;;  %p4445_p0 = scmp.lt.s32.totalorder %s142_s11, %s142_s11 }
  0x89   :  { %p4441_p13 = scmp.ne.s32.totalorder %s142_s11, %s4440_s17  ;;  %p4446_p1 = scmp.lt.s32.totalorder %s4440_s17, %s4440_s17 }
  0x8b   :  { %p4447_p2 = por %p4446_p1, %p4445_p0 }
  0x8d   :  { %p4448_p3 = pnand %p4447_p2, %p4441_p13 }
  0x8f   :  { %4451 = shalt.err (!%p4448_p3)
}
  0x90   :  { %147 = dma.hbm_to_vmem [thread:$0]  %s5398_s12, 1536, %s142_s11, [#allocation15], %s4560_s22, %s4560_s22, %s4561_s9  }
  0x91   :  { %s4460_s10 = scalar_lea.vmem %s166_s8, 1536  ;;  %p4465_p5 = scmp.lt.s32.totalorder %s166_s8, %s166_s8 }
  0x92   :  { %p4461_p4 = scmp.ne.s32.totalorder %s166_s8, %s4460_s10  ;;  %p4466_p6 = scmp.lt.s32.totalorder %s4460_s10, %s4460_s10 }
  0x94   :  { %p4467_p7 = por %p4466_p6, %p4465_p5 }
  0x96   :  { %p4468_p8 = pnand %p4467_p7, %p4461_p4 }
  0x98   :  { %4471 = shalt.err (!%p4468_p8)
}
  0x99   :  { %171 = dma.hbm_to_vmem [thread:$0]  %s5400_s14, 1536, %s166_s8, [#allocation18], %s4560_s22, %s4560_s22, %s4561_s9  }
  0x9a   :  { %s4569_s4 = smov [#allocation22]   ;;  %s4570_s0 = smov [#allocation25]  }
  0x9b   :  { %s189_s13 = sshll.u32 %s4569_s4, 4  ;;  %s215_s12 = sshll.u32 %s4570_s0, 4  ;;  %s190_s13 = int_to_ptr.vmem [resolvable:$true] %s189_s13  ;;  %s216_s12 = int_to_ptr.vmem [resolvable:$true] %s215_s12 }
  0x9c   :  { %s4480_s21 = scalar_lea.vmem %s190_s13, 1536  ;;  %p4485_p10 = scmp.lt.s32.totalorder %s190_s13, %s190_s13 }
  0x9d   :  { %p4481_p9 = scmp.ne.s32.totalorder %s190_s13, %s4480_s21  ;;  %p4486_p11 = scmp.lt.s32.totalorder %s4480_s21, %s4480_s21 }
  0x9f   :  { %p4487_p12 = por %p4486_p11, %p4485_p10 }
  0xa1   :  { %p4488_p13 = pnand %p4487_p12, %p4481_p9 }
  0xa3   :  { %4491 = shalt.err (!%p4488_p13)
}
  0xa4   :  { %195 = dma.hbm_to_vmem [thread:$0]  %s5402_s16, 1536, %s190_s13, [#allocation21], %s4560_s22, %s4560_s22, %s4561_s9  }
  0xa5   :  { %s4500_s14 = scalar_lea.vmem %s216_s12, 48  ;;  %s4504_s5 = scalar_lea.vmem %s216_s12, 64 }
  0xa6   :  { %p4501_p0 = scmp.ne.s32.totalorder %s216_s12, %s4500_s14  ;;  %p4505_p1 = scmp.lt.s32.totalorder %s216_s12, %s216_s12 }
  0xa7   :  { %p4506_p2 = scmp.lt.s32.totalorder %s4504_s5, %s4500_s14 }
  0xa9   :  { %p4507_p3 = por %p4506_p2, %p4505_p1 }
  0xab   :  { %p4508_p4 = pnand %p4507_p3, %p4501_p0 }
  0xad   :  { %4511 = shalt.err (!%p4508_p4)
}
  0xae   :  { %221 = dma.hbm_to_vmem [thread:$0]  %s5405_s19, 48, %s216_s12, [#allocation24], %s4552_s29, %s4552_s29, %s4553_s30  }
  0xaf   :  { %4532 = dma.done.wait [#allocation3], 256  }
  0xb0   :  { %4533 = vsyncadd [#allocation3], 4294967040 }
  0xb1   :  { %4534 = dma.done.wait [#allocation6], 144  }
  0xb2   :  { %4535 = vsyncadd [#allocation6], 4294967152 }
  0xb3   :  { %4536 = dma.done.wait [#allocation9], 1584  }
  0xb4   :  { %4537 = vsyncadd [#allocation9], 4294965712 }
  0xb5   :  { %4538 = dma.done.wait [#allocation12], 1584  }
  0xb6   :  { %4539 = vsyncadd [#allocation12], 4294965712 }
  0xb7   :  { %4540 = dma.done.wait [#allocation15], 1584  }
  0xb8   :  { %4541 = vsyncadd [#allocation15], 4294965712 }
  0xb9   :  { %4542 = dma.done.wait [#allocation18], 1584  }
  0xba   :  { %4543 = vsyncadd [#allocation18], 4294965712 }
  0xbb   :  { %4544 = dma.done.wait [#allocation21], 1584  }
  0xbc   :  { %4545 = vsyncadd [#allocation21], 4294965712 }
  0xbd   :  { %4546 = dma.done.wait [#allocation24], 96  }
  0xbe   :  { %4547 = vsyncadd [#allocation24], 4294967200  ;;  %v4571_v0 = vmov 0   ;;  %s5417_s29 = sld [smem:[#allocation38_spill]]  ;;  %v453_v7 = vld [vmem:[#allocation10 + $0x18] sm:$0xff]  ;;  %v452_v8 = vld [vmem:[#allocation10 + $0x10] sm:$0xff] }
  0xbf   :  { %4043 = vset.pattern.permute.xlu1 %v4571_v0  ;;  %4042 = vset.pattern.permute.xlu0 %v4571_v0  ;;  %v451_v9 = vld [vmem:[#allocation10 + $0x8] sm:$0xff]  ;;  %v450_v10 = vld [vmem:[#allocation10] sm:$0xff]  ;;  %v359_v12 = vld [vmem:[%s5392_s6 + $0x10] sm:$0xff]  ;;  %vm368_vm0 = vcmask 261120   ;;  %s5418_s23 = sld [smem:[#allocation37_spill]]  ;;  %vm4573_vm1 = vmmov 0  }
  0xc0   :  { %3668 = vmatprep.subr.mxu1 %v453_v7  ;;  %v360_v11 = vld [vmem:[%s5392_s6 + $0x18] sm:$0xff]  ;;  %v349_v13 = vld [vmem:[#allocation2] sm:$0xff]  ;;  %v358_v14 = vld [vmem:[%s5392_s6 + $0x8] sm:$0xff]  ;;  %s5419_s28 = sld [smem:[#allocation40_spill]]  ;;  %vm898_vm8 = vcmask 130048   ;;  %vm985_vm9 = vcmask 392192  }
  0xc1   :  { %3669 = vmatpush3.msra.mxu1 %v453_v7  ;;  %3657 = vmatprep.subr.mxu0 %v360_v11  ;;  %v761_v15 = vld [vmem:[#allocation16 + $0x18] sm:$0xff]  ;;  %v350_v17 = vld [vmem:[#allocation2 + $0x8] sm:$0xff]  ;;  %v3336_v18 = vld [vmem:[#allocation5] ss:$0 sm:$0xff]  ;;  %s4574_s8 = smov 32   ;;  %s4576_s30 = smov [#allocation26]  }
  0xc2   :  { %3670 = vmatprep.subr.mxu1 %v452_v8  ;;  %3658 = vmatpush3.msra.mxu0 %v360_v11  ;;  %v357_v16 = vld [vmem:[%s5392_s6] sm:$0xff]  ;;  %v760_v51 = vld [vmem:[#allocation16 + $0x10] sm:$0xff]  ;;  %v759_v53 = vld [vmem:[#allocation16 + $0x8] sm:$0xff]  ;;  %s3317_s3 = sshll.u32 %s4576_s30, 4  ;;  %s3318_s3 = int_to_ptr.vmem [resolvable:$true] %s3317_s3 }
  0xc3   :  { %3671 = vmatpush3.msra.mxu1 %v452_v8  ;;  %3665 = vmatprep.mubr.msk.f32.mxu0 %vm368_vm0, %v349_v13  ;;  %v758_v56 = vld [vmem:[#allocation16] sm:$0xff]  ;;  %v637_v0 = vld [vmem:[#allocation13 + $0x18] sm:$0xff]  ;;  %s4512_s11 = scalar_lea.vmem %s3318_s3, 256  ;;  %p4517_p6 = scmp.lt.s32.totalorder %s3318_s3, %s3318_s3 }
  0xc4   :  { %v270_v1 = vld [vmem:[%s5417_s29 + $0x10] sm:$0xff]  ;;  %v268_v2 = vld [vmem:[%s5417_s29] sm:$0xff]  ;;  %v271_v3 = vld [vmem:[%s5417_s29 + $0x18] sm:$0xff]  ;;  %3672 = vmatprep.subr.mxu1 %v451_v9  ;;  %3659 = vmatprep.subr.mxu0 %v359_v12  ;;  %p4513_p5 = scmp.ne.s32.totalorder %s3318_s3, %s4512_s11  ;;  %p4518_p7 = scmp.lt.s32.totalorder %s4512_s11, %s4512_s11 }
  0xc5   :  { %287 = vperm.xlu1 %4043, %v270_v1   ;;  %277 = vperm.xlu0 %4042, %v268_v2   ;;  %v269_v4 = vld [vmem:[%s5417_s29 + $0x8] sm:$0xff]  ;;  %v272_v6 = vld [vmem:[%s5417_s29 + $0x20] sm:$0xff]  ;;  %v353_v60 = vld [vmem:[%s5418_s23 + $0x10] sm:$0xff] }
  0xc6   :  { %v273_v5 = vld [vmem:[%s5417_s29 + $0x28] sm:$0xff]  ;;  %3673 = vmatpush3.msra.mxu1 %v451_v9  ;;  %3660 = vmatpush3.msra.mxu0 %v359_v12  ;;  %v351_v57 = vld [vmem:[%s5418_s23] sm:$0xff]  ;;  %v354_v61 = vld [vmem:[%s5418_s23 + $0x18] sm:$0xff]  ;;  %p4519_p8 = por %p4518_p7, %p4517_p6 }
  0xc7   :  { %3674 = vmatprep.subr.mxu1 %v450_v10  ;;  %3661 = vmatprep.subr.mxu0 %v358_v14  ;;  %v352_v59 = vld [vmem:[%s5418_s23 + $0x8] sm:$0xff]  ;;  %v355_v62 = vld [vmem:[%s5418_s23 + $0x20] sm:$0xff]  ;;  %v636_v1 = vld [vmem:[#allocation13 + $0x10] sm:$0xff] }
  0xc8   :  { %3675 = vmatpush3.msra.mxu1 %v450_v10  ;;  %3662 = vmatpush3.msra.mxu0 %v358_v14  ;;  %v356_v63 = vld [vmem:[%s5418_s23 + $0x28] sm:$0xff]  ;;  %p4520_p9 = pnand %p4519_p8, %p4513_p5 }
  0xc9   :  { %292 = vperm.xlu1 %4043, %v271_v3   ;;  %282 = vperm.xlu0 %4042, %v269_v4   ;;  %v635_v2 = vld [vmem:[#allocation13 + $0x8] sm:$0xff]  ;;  %v634_v3 = vld [vmem:[#allocation13] sm:$0xff]  ;;  %v4572_v4 = vmov 0.0  }
  0xca   :  { %3702 = vmatprep.subr.mxu1 %v761_v15  ;;  %3663 = vmatprep.subr.mxu0 %v357_v16 }
  0xcb   :  { %3664 = vmatpush3.msra.mxu0 %v357_v16 }
  0xcc   :  { %3666 = vmatmul.mubr.msk.f32.vlgmr.msra.gmra.mxu0 %vm368_vm0, %v350_v17  ;;  %3685 = vmatprep.subr.mxu0 %v637_v0 }
  0xcd   :  { %302 = vperm.xlu1 %4043, %v273_v5   ;;  %297 = vperm.xlu0 %4042, %v272_v6   ;;  %v3340_v5 = vld [vmem:[#allocation11] ss:$0 sm:$0xff] }
  0xce   :  { %3686 = vmatpush3.msra.mxu0 %v637_v0 }
  0xcf   :  { %3687 = vmatprep.subr.mxu0 %v636_v1 }
  0xd0   :  { %3688 = vmatpush3.msra.mxu0 %v636_v1 }
  0xd1   :  { %3689 = vmatprep.subr.mxu0 %v635_v2 }
  0xd2   :  { %3690 = vmatpush3.msra.mxu0 %v635_v2 }
  0xd3   :  { %3691 = vmatprep.subr.mxu0 %v634_v3 }
  0xd4   :  { %3692 = vmatpush3.msra.mxu0 %v634_v3 }
  0xd5   :  { %3719 = vmatprep.subr.bf16.mxu0 %v4572_v4 }
 0x140   :  { %v288_v19 = vpop.permute.xlu1 %287  ;;  %v278_v20 = vpop.permute.xlu0 %277 }
 0x141   :  { %v313_v21 = vsub.f32 %v288_v19, %v3336_v18  ;;  %v311_v22 = vsub.f32 %v278_v20, %v3336_v18 }
 0x143   :  { %v319_v23 = vmul.f32 -4.0, %v313_v21  ;;  %v317_v24 = vmul.f32 -4.0, %v311_v22 }
 0x144   :  { %v293_v25 = vpop.permute.xlu1 %292  ;;  %v283_v26 = vpop.permute.xlu0 %282 }
 0x145   :  { %v323_v27 = vmul.f32 %v317_v24, %v311_v22  ;;  %v314_v28 = vsub.f32 %v293_v25, %v3336_v18  ;;  %v312_v29 = vsub.f32 %v283_v26, %v3336_v18  ;;  %v325_v30 = vmul.f32 %v319_v23, %v313_v21 }
 0x147   :  { %v329_v31 = vmul.f32 1.442695, %v323_v27  ;;  %v320_v32 = vmul.f32 -4.0, %v314_v28  ;;  %v318_v33 = vmul.f32 -4.0, %v312_v29  ;;  %v333_v40 = vmul.f32 1.442695, %v325_v30 }
 0x148   :  { %v303_v34 = vpop.permute.xlu1 %302  ;;  %v298_v35 = vpop.permute.xlu0 %297 }
 0x149   :  { %v326_v36 = vmul.f32 %v320_v32, %v314_v28  ;;  %v324_v37 = vmul.f32 %v318_v33, %v312_v29  ;;  %v316_v38 = vsub.f32 %v303_v34, %v3336_v18  ;;  %4048 = vpow2.f32 %v329_v31 }
 0x14a   :  { %v315_v39 = vsub.f32 %v298_v35, %v3336_v18 }
 0x14b   :  { %v331_v41 = vmul.f32 1.442695, %v324_v37  ;;  %v322_v42 = vmul.f32 -4.0, %v316_v38  ;;  %v335_v44 = vmul.f32 1.442695, %v326_v36 }
 0x14c   :  { %v321_v43 = vmul.f32 -4.0, %v315_v39 }
 0x14d   :  { %4050 = vpow2.f32 %v331_v41  ;;  %v328_v45 = vmul.f32 %v322_v42, %v316_v38 }
 0x14e   :  { %v327_v46 = vmul.f32 %v321_v43, %v315_v39  ;;  %4052 = vpow2.f32 %v333_v40 }
 0x14f   :  { %4054 = vpow2.f32 %v335_v44  ;;  %v339_v48 = vmul.f32 1.442695, %v328_v45 }
 0x150   :  { %v337_v47 = vmul.f32 1.442695, %v327_v46 }
 0x152   :  { %4056 = vpow2.f32 %v337_v47 }
 0x153   :  { %4058 = vpow2.f32 %v339_v48 }
 0x156   :  { %v4800_v49 = vpop.eup %4048 }
 0x157   :  { %3676 = vmatprep.mubr.msk.f32.mxu1 %vm368_vm0, %v4800_v49 }
 0x15a   :  { %v4804_v50 = vpop.eup %4050 }
 0x15b   :  { %v4806_v52 = vpop.eup %4052  ;;  %3677 = vmatmul.mubr.msk.f32.vlgmr.msra.gmra.mxu1 %vm368_vm0, %v4804_v50 }
 0x15c   :  { %3679 = vmatprep.mubr.msk.f32.mxu1 %vm368_vm0, %v4806_v52  ;;  %3703 = vmatpush3.msra.mxu1 %v761_v15  ;;  %v4812_v54 = vpop.eup %4054 }
 0x15d   :  { %3704 = vmatprep.subr.mxu1 %v760_v51 }
 0x15e   :  { %3705 = vmatpush3.msra.mxu1 %v760_v51  ;;  %v3337_v51 = vld [vmem:[#allocation8] ss:$0 sm:$0xff] }
 0x15f   :  { %v4814_v55 = vpop.eup %4056  ;;  %3680 = vmatmul.mubr.msk.f32.gmra.mxu1 %vm368_vm0, %v4812_v54  ;;  %3706 = vmatprep.subr.mxu1 %v759_v53 }
 0x160   :  { %3682 = vmatprep.mubr.msk.f32.mxu1 %vm368_vm0, %v4814_v55  ;;  %3707 = vmatpush3.msra.mxu1 %v759_v53  ;;  %v4823_v58 = vpop.eup %4058 }
 0x161   :  { %3708 = vmatprep.subr.mxu1 %v758_v56 }
 0x162   :  { %3709 = vmatpush3.msra.mxu1 %v758_v56 }
 0x163   :  { %3683 = vmatmul.mubr.msk.f32.gmra.mxu1 %vm368_vm0, %v4823_v58  ;;  %3733 = vmatprep.subr.bf16.mxu1 %v4572_v4 }
 0x164   :  { %3710 = vmatprep.mubr.msk.f32.mxu1 %vm368_vm0, %v351_v57 }
 0x167   :  { %3711 = vmatmul.mubr.msk.f32.vlgmr.msra.gmra.mxu1 %vm368_vm0, %v352_v59 }
 0x168   :  { %3713 = vmatprep.mubr.msk.f32.mxu1 %vm368_vm0, %v353_v60 }
 0x16b   :  { %3714 = vmatmul.mubr.msk.f32.gmra.mxu1 %vm368_vm0, %v354_v61 }
 0x16c   :  { %3716 = vmatprep.mubr.msk.f32.mxu1 %vm368_vm0, %v355_v62 }
 0x16f   :  { %3717 = vmatmul.mubr.msk.f32.gmra.mxu1 %vm368_vm0, %v356_v63 }
 0x170   :  { %3739 = vmatprep.mubr.msk.bf16.mxu1 %vm4573_vm1, %v4572_v4 }
 0x18c   :  { %v3667_v48 = vpop.f32.mrf.mxu0 }
 0x18d   :  { %v447_v60 = vadd.f32 %v3667_v48, %v3337_v51  ;;  %v1809_v48 = vld [vmem:[#allocation16 + $0x20] sm:$0xff] }
 0x18e   :  { %v441_v53 = vpop.f32.mrf.mxu0 }
 0x18f   :  { %v442_v61 = vadd.f32 %v3337_v51, %v441_v53 }
 0x191   :  { %v882_v3 = vpack.c.bf16 %v447_v60, %v442_v61 }
 0x21b   :  { %v3678_v6 = vpop.f32.mrf.mxu1 }
 0x21c   :  { %v4852_v7 = vadd.f32 %v3678_v6, %v3340_v5 }
 0x21d   :  { %v545_v8 = vpop.f32.mrf.mxu1 }
 0x21e   :  { %v4855_v9 = vmul.f32 0.5, %v4852_v7  ;;  %v4857_v10 = vadd.f32 %v3340_v5, %v545_v8 }
 0x21f   :  { %v3681_v11 = vpop.f32.mrf.mxu1 }
 0x220   :  { %v581_v12 = vmin.f32 %v4855_v9, 14.0  ;;  %v4861_v13 = vmul.f32 0.5, %v4857_v10  ;;  %v4863_v14 = vadd.f32 %v3681_v11, %v3340_v5  ;;  %vm587_vm3 = vcmp.gt.f32.partialorder %v4855_v9, 14.0 }
 0x221   :  { %v555_v15 = vpop.f32.mrf.mxu1 }
 0x222   :  { %v594_v16 = vmul.f32 1.442695, %v581_v12  ;;  %v580_v17 = vmin.f32 %v4861_v13, 14.0  ;;  %v4867_v18 = vmul.f32 0.5, %v4863_v14  ;;  %v4869_v19 = vadd.f32 %v3340_v5, %v555_v15  ;;  %v1239_v12 = vld [vmem:[%s5404_s18 + $0x18] sm:$0xff] }
 0x223   :  { %v3684_v20 = vpop.f32.mrf.mxu1  ;;  %vm586_vm2 = vcmp.gt.f32.partialorder %v4861_v13, 14.0 }
 0x224   :  { %4060 = vpow2.f32 %v594_v16  ;;  %v592_v21 = vmul.f32 1.442695, %v580_v17  ;;  %v583_v22 = vmin.f32 %v4867_v18, 14.0  ;;  %v4873_v23 = vmul.f32 0.5, %v4869_v19 }
 0x225   :  { %v4875_v24 = vadd.f32 %v3684_v20, %v3340_v5  ;;  %v565_v25 = vpop.f32.mrf.mxu1  ;;  %vm589_vm5 = vcmp.gt.f32.partialorder %v4867_v18, 14.0 }
 0x226   :  { %4062 = vpow2.f32 %v592_v21  ;;  %v598_v26 = vmul.f32 1.442695, %v583_v22  ;;  %v4877_v27 = vadd.f32 %v3340_v5, %v565_v25  ;;  %v582_v28 = vmin.f32 %v4873_v23, 14.0 }
 0x227   :  { %v4881_v29 = vmul.f32 0.5, %v4875_v24  ;;  %vm588_vm4 = vcmp.gt.f32.partialorder %v4873_v23, 14.0  ;;  %v1237_v23 = vld [vmem:[%s5404_s18 + $0x8] sm:$0xff] }
 0x228   :  { %4064 = vpow2.f32 %v598_v26  ;;  %v4884_v30 = vmul.f32 0.5, %v4877_v27  ;;  %v596_v31 = vmul.f32 1.442695, %v582_v28  ;;  %v1236_v26 = vld [vmem:[%s5404_s18] sm:$0xff]  ;;  %v1518_v28 = vld [vmem:[#allocation10 + $0x38] sm:$0xff] }
 0x229   :  { %v585_v32 = vmin.f32 %v4881_v29, 14.0  ;;  %vm591_vm7 = vcmp.gt.f32.partialorder %v4881_v29, 14.0 }
 0x22a   :  { %v584_v33 = vmin.f32 %v4884_v30, 14.0  ;;  %4066 = vpow2.f32 %v596_v31  ;;  %vm590_vm6 = vcmp.gt.f32.partialorder %v4884_v30, 14.0  ;;  %v3354_v30 = vld [vmem:[#allocation17] ss:$0 sm:$0xff] }
 0x22b   :  { %v602_v34 = vmul.f32 1.442695, %v585_v32  ;;  %v4941_v32 = vld [vmem:[%s5419_s28 + $0x10] sm:$0xff]  }
 0x22c   :  { %v600_v35 = vmul.f32 1.442695, %v584_v33 }
 0x22d   :  { %4068 = vpow2.f32 %v602_v34 }
 0x22e   :  { %4070 = vpow2.f32 %v600_v35 }
 0x231   :  { %v4061_v36 = vpop.eup %4060 }
 0x232   :  { %v605_v37 = vadd.f32 1.0, %v4061_v36 }
 0x233   :  { %v4063_v38 = vpop.eup %4062 }
 0x234   :  { %4072 = vlog2.f32 %v605_v37  ;;  %v604_v39 = vadd.f32 1.0, %v4063_v38 }
 0x235   :  { %v4065_v40 = vpop.eup %4064 }
 0x236   :  { %4074 = vlog2.f32 %v604_v39  ;;  %v607_v41 = vadd.f32 1.0, %v4065_v40  ;;  %v1517_v39 = vld [vmem:[#allocation10 + $0x30] sm:$0xff] }
 0x237   :  { %v4067_v42 = vpop.eup %4066 }
 0x238   :  { %4076 = vlog2.f32 %v607_v41  ;;  %v606_v43 = vadd.f32 1.0, %v4067_v42  ;;  %v1516_v42 = vld [vmem:[#allocation10 + $0x28] sm:$0xff] }
 0x23a   :  { %v4069_v44 = vpop.eup %4068  ;;  %4078 = vlog2.f32 %v606_v43  ;;  %v1515_v43 = vld [vmem:[#allocation10 + $0x20] sm:$0xff] }
 0x23b   :  { %v4071_v45 = vpop.eup %4070  ;;  %v609_v46 = vadd.f32 1.0, %v4069_v44 }
 0x23c   :  { %v608_v47 = vadd.f32 1.0, %v4071_v45  ;;  %v1812_v45 = vld [vmem:[#allocation16 + $0x38] sm:$0xff] }
 0x23d   :  { %4080 = vlog2.f32 %v609_v46  ;;  %v1811_v46 = vld [vmem:[#allocation16 + $0x30] sm:$0xff] }
 0x23e   :  { %4082 = vlog2.f32 %v608_v47  ;;  %v1810_v47 = vld [vmem:[#allocation16 + $0x28] sm:$0xff] }
 0x241   :  { %v4073_v56 = vpop.eup %4072 }
 0x242   :  { %v613_v57 = vmul.f32 0.6931472, %v4073_v56 }
 0x243   :  { %v4075_v59 = vpop.eup %4074 }
 0x244   :  { %v611_v62 = vmul.f32 0.6931472, %v4075_v59  ;;  %v623_v0 = vmul.f32 2.0, %v613_v57 }
 0x245   :  { %v4077_v63 = vpop.eup %4076 }
 0x246   :  { %v622_v1 = vmul.f32 2.0, %v611_v62  ;;  %v617_v2 = vmul.f32 0.6931472, %v4077_v63  ;;  %v629_v8 = vsel %vm587_vm3, %v4852_v7, %v623_v0 }
 0x247   :  { %v4079_v5 = vpop.eup %4078 }
 0x248   :  { %v628_v6 = vsel %vm586_vm2, %v4857_v10, %v622_v1  ;;  %v615_v11 = vmul.f32 0.6931472, %v4079_v5  ;;  %v625_v16 = vmul.f32 2.0, %v617_v2 }
 0x249   :  { %3693 = vmatprep.mubr.msk.f32.mxu0 %vm368_vm0, %v628_v6  ;;  %v3347_v6 = vld [vmem:[#allocation14] ss:$0 sm:$0xff] }
 0x24a   :  { %v4081_v15 = vpop.eup %4080  ;;  %3694 = vmatmul.mubr.msk.f32.vlgmr.msra.gmra.mxu0 %vm368_vm0, %v629_v8  ;;  %v624_v17 = vmul.f32 2.0, %v615_v11  ;;  %v631_v10 = vsel %vm589_vm5, %v4863_v14, %v625_v16  ;;  %v4912_v14 = vld [vmem:[%s5419_s28] sm:$0xff]  }
 0x24b   :  { %v4083_v13 = vpop.eup %4082  ;;  %3720 = vmatpush3.bf16.msra.mxu0 %v882_v3  ;;  %v621_v20 = vmul.f32 0.6931472, %v4081_v15 }
 0x24c   :  { %v619_v9 = vmul.f32 0.6931472, %v4083_v13  ;;  %3765 = vmatprep.subr.mxu0 %v1239_v12  ;;  %v630_v7 = vsel %vm588_vm4, %v4869_v19, %v624_v17  ;;  %v1238_v19 = vld [vmem:[%s5404_s18 + $0x10] sm:$0xff] }
 0x24d   :  { %3696 = vmatprep.mubr.msk.f32.mxu0 %vm368_vm0, %v630_v7  ;;  %v627_v22 = vmul.f32 2.0, %v621_v20 }
 0x24e   :  { %v626_v21 = vmul.f32 2.0, %v619_v9  ;;  %3697 = vmatmul.mubr.msk.f32.gmra.mxu0 %vm368_vm0, %v631_v10 }
 0x24f   :  { %v633_v18 = vsel %vm591_vm7, %v4875_v24, %v627_v22  ;;  %v3712_v24 = vpop.f32.mrf.mxu1  ;;  %v3375_v22 = vld [vmem:[#allocation25] ss:$0 sm:$0xff] }
 0x250   :  { %v632_v25 = vsel %vm590_vm6, %v4877_v27, %v626_v21  ;;  %v4932_v27 = vld [vmem:[%s5419_s28 + $0x8] sm:$0xff]   ;;  %v4949_v36 = vadd.f32 %v3712_v24, %v3354_v30 }
 0x251   :  { %3699 = vmatprep.mubr.msk.f32.mxu0 %vm368_vm0, %v632_v25  ;;  %v853_v29 = vpop.f32.mrf.mxu1 }
 0x252   :  { %3700 = vmatmul.mubr.msk.f32.gmra.mxu0 %vm368_vm0, %v633_v18  ;;  %v4943_v33 = vadd.f32 %v3354_v30, %v853_v29 }
 0x253   :  { %3721 = vmatprep.mubr.msk.bf16.mxu0 %vm4573_vm1, %v4572_v4  ;;  %v3715_v31 = vpop.f32.mrf.mxu1 }
 0x254   :  { %v4953_v40 = vadd.f32 %v3715_v31, %v3354_v30 }
 0x255   :  { %v863_v34 = vpop.f32.mrf.mxu1 }
 0x256   :  { %3722 = vmatmul.mubr.msk.bf16.vlgmr.msra.gmra.mxu0 %vm898_vm8, %v4912_v14  ;;  %v4951_v37 = vadd.f32 %v3354_v30, %v863_v34 }
 0x257   :  { %3725 = vmatprep.mubr.msk.bf16.mxu0 %vm4573_vm1, %v4572_v4  ;;  %3766 = vmatpush3.msra.mxu0 %v1239_v12  ;;  %v3718_v35 = vpop.f32.mrf.mxu1 }
 0x258   :  { %3767 = vmatprep.subr.mxu0 %v1238_v19  ;;  %v879_v44 = vadd.f32 %v3718_v35, %v3354_v30 }
 0x259   :  { %3768 = vmatpush3.msra.mxu0 %v1238_v19  ;;  %v873_v38 = vpop.f32.mrf.mxu1 }
 0x25a   :  { %3769 = vmatprep.subr.mxu0 %v1237_v23  ;;  %v874_v41 = vadd.f32 %v3354_v30, %v873_v38 }
 0x25b   :  { %3770 = vmatpush3.msra.mxu0 %v1237_v23 }
 0x25c   :  { %3771 = vmatprep.subr.mxu0 %v1236_v26 }
 0x25d   :  { %3772 = vmatpush3.msra.mxu0 %v1236_v26 }
 0x25e   :  { %3726 = vmatmul.mubr.msk.bf16.gmra.mxu0 %vm898_vm8, %v4932_v27  ;;  %3793 = vmatprep.subr.mxu0 %v1518_v28 }
 0x25f   :  { %3729 = vmatprep.mubr.msk.bf16.mxu0 %vm4573_vm1, %v4572_v4 }
 0x266   :  { %3730 = vmatmul.mubr.msk.bf16.gmra.mxu0 %vm898_vm8, %v4941_v32 }
 0x267   :  { %3773 = vmatprep.mubr.msk.f32.mxu0 %vm368_vm0, %v4943_v33 }
 0x26e   :  { %3774 = vmatmul.mubr.msk.f32.vlgmr.msra.gmra.mxu0 %vm368_vm0, %v4949_v36 }
 0x26f   :  { %3776 = vmatprep.mubr.msk.f32.mxu0 %vm368_vm0, %v4951_v37  ;;  %3794 = vmatpush3.msra.mxu0 %v1518_v28 }
 0x270   :  { %3795 = vmatprep.subr.mxu0 %v1517_v39 }
 0x271   :  { %3796 = vmatpush3.msra.mxu0 %v1517_v39 }
 0x272   :  { %3777 = vmatmul.mubr.msk.f32.gmra.mxu0 %vm368_vm0, %v4953_v40  ;;  %3797 = vmatprep.subr.mxu0 %v1516_v42 }
 0x273   :  { %3779 = vmatprep.mubr.msk.f32.mxu0 %vm368_vm0, %v874_v41  ;;  %3798 = vmatpush3.msra.mxu0 %v1516_v42 }
 0x274   :  { %3799 = vmatprep.subr.mxu0 %v1515_v43 }
 0x275   :  { %3800 = vmatpush3.msra.mxu0 %v1515_v43 }
 0x276   :  { %3780 = vmatmul.mubr.msk.f32.gmra.mxu0 %vm368_vm0, %v879_v44  ;;  %3827 = vmatprep.subr.mxu0 %v1812_v45 }
 0x277   :  { %3801 = vmatprep.mubr.msk.f32.mxu0 %vm368_vm0, %v4800_v49 }
 0x27a   :  { %3802 = vmatmul.mubr.msk.f32.vlgmr.msra.gmra.mxu0 %vm368_vm0, %v4804_v50 }
 0x27b   :  { %3804 = vmatprep.mubr.msk.f32.mxu0 %vm368_vm0, %v4806_v52  ;;  %3828 = vmatpush3.msra.mxu0 %v1812_v45 }
 0x27c   :  { %3829 = vmatprep.subr.mxu0 %v1811_v46 }
 0x27d   :  { %3830 = vmatpush3.msra.mxu0 %v1811_v46 }
 0x27e   :  { %3805 = vmatmul.mubr.msk.f32.gmra.mxu0 %vm368_vm0, %v4812_v54  ;;  %3831 = vmatprep.subr.mxu0 %v1810_v47 }
 0x27f   :  { %3807 = vmatprep.mubr.msk.f32.mxu0 %vm368_vm0, %v4814_v55  ;;  %3832 = vmatpush3.msra.mxu0 %v1810_v47 }
 0x280   :  { %3833 = vmatprep.subr.mxu0 %v1809_v48 }
 0x281   :  { %3834 = vmatpush3.msra.mxu0 %v1809_v48 }
 0x282   :  { %3808 = vmatmul.mubr.msk.f32.gmra.mxu0 %vm368_vm0, %v4823_v58  ;;  %3858 = vmatprep.subr.bf16.mxu0 %v4572_v4 }
 0x30a   :  { %v3695_v51 = vpop.f32.mrf.mxu0 }
 0x30b   :  { %v735_v10 = vadd.f32 %v3695_v51, %v3347_v6 }
 0x30c   :  { %v729_v53 = vpop.f32.mrf.mxu0 }
 0x30d   :  { %v730_v26 = vadd.f32 %v3347_v6, %v729_v53 }
 0x30e   :  { %v3698_v56 = vpop.f32.mrf.mxu0 }
 0x30f   :  { %v745_v15 = vadd.f32 %v3698_v56, %v3347_v6 }
 0x310   :  { %v739_v57 = vpop.f32.mrf.mxu0 }
 0x311   :  { %v740_v20 = vadd.f32 %v3347_v6, %v739_v57 }
 0x312   :  { %v3701_v59 = vpop.f32.mrf.mxu0 }
 0x313   :  { %v755_v16 = vadd.f32 %v3701_v59, %v3347_v6 }
 0x314   :  { %v749_v60 = vpop.f32.mrf.mxu0 }
 0x315   :  { %v750_v11 = vadd.f32 %v3347_v6, %v749_v60  ;;  %v1033_v60 = vld [vmem:[#allocation19 + $0x18] sm:$0xff]  ;;  %v1032_v6 = vld [vmem:[#allocation19 + $0x10] sm:$0xff] }
 0x316   :  { %v942_v61 = vpop.f32.mrf.mxu0 }
 0x317   :  { %v965_v34 = vmul.f32 %v942_v61, %v730_v26 }
 0x318   :  { %v3723_v62 = vpop.f32.mrf.mxu0 }
 0x319   :  { %v971_v46 = vadd.f32 %v965_v34, %v4943_v33 }
 0x31a   :  { %v945_v63 = vpop.f32.mrf.mxu0 }
 0x31b   :  { %v966_v23 = vmul.f32 %v945_v63, %v735_v10  ;;  %v5007_v63 = vld [vmem:[#allocation7] sm:$0xff]  }
 0x31c   :  { %v3724_v0 = vpop.f32.mrf.mxu0 }
 0x31e   :  { %v950_v1 = vpop.f32.mrf.mxu0 }
 0x31f   :  { %v967_v25 = vmul.f32 %v950_v1, %v740_v20 }
 0x320   :  { %v3727_v2 = vpop.f32.mrf.mxu0 }
 0x321   :  { %v973_v35 = vadd.f32 %v967_v25, %v4951_v37 }
 0x322   :  { %v953_v3 = vpop.f32.mrf.mxu0 }
 0x323   :  { %v968_v9 = vmul.f32 %v953_v3, %v745_v15 }
 0x324   :  { %v3728_v5 = vpop.f32.mrf.mxu0 }
 0x325   :  { %v974_v28 = vadd.f32 %v968_v9, %v4953_v40 }
 0x326   :  { %v958_v8 = vpop.f32.mrf.mxu0 }
 0x327   :  { %v969_v13 = vmul.f32 %v958_v8, %v750_v11  ;;  %v978_v43 = vpack.c.bf16 %v974_v28, %v973_v35 }
 0x328   :  { %v3731_v12 = vpop.f32.mrf.mxu0 }
 0x329   :  { %v975_v18 = vadd.f32 %v969_v13, %v874_v41  ;;  %v972_v41 = vadd.f32 %v966_v23, %v4949_v36 }
 0x32a   :  { %v961_v17 = vpop.f32.mrf.mxu0 }
 0x32b   :  { %v970_v7 = vmul.f32 %v961_v17, %v755_v16  ;;  %v977_v56 = vpack.c.bf16 %v972_v41, %v971_v46 }
 0x32c   :  { %v3732_v21 = vpop.f32.mrf.mxu0 }
 0x32d   :  { %v976_v19 = vadd.f32 %v970_v7, %v879_v44 }
 0x32e   :  { %v3775_v24 = vpop.f32.mrf.mxu0 }
 0x32f   :  { %v979_v29 = vpack.c.bf16 %v976_v19, %v975_v18  ;;  %v4977_v30 = vadd.f32 %v3775_v24, %v3375_v22 }
 0x330   :  { %v1331_v31 = vpop.f32.mrf.mxu0 }
 0x331   :  { %v4981_v38 = vmul.f32 0.5, %v4977_v30  ;;  %v4983_v39 = vadd.f32 %v3375_v22, %v1331_v31  ;;  %3734 = vmatpush3.bf16.msra.mxu1 %v979_v29 }
 0x332   :  { %v3778_v42 = vpop.f32.mrf.mxu0  ;;  %3735 = vmatprep.subr.bf16.mxu1 %v4572_v4 }
 0x333   :  { %v1367_v40 = vmin.f32 %v4981_v38, 14.0  ;;  %v4989_v44 = vmul.f32 0.5, %v4983_v39  ;;  %v4991_v45 = vadd.f32 %v3778_v42, %v3375_v22  ;;  %vm1373_vm10 = vcmp.gt.f32.partialorder %v4981_v38, 14.0 }
 0x334   :  { %v1341_v37 = vpop.f32.mrf.mxu0 }
 0x335   :  { %v1380_v47 = vmul.f32 1.442695, %v1367_v40  ;;  %v1366_v48 = vmin.f32 %v4989_v44, 14.0  ;;  %v4996_v51 = vmul.f32 0.5, %v4991_v45  ;;  %3736 = vmatpush3.bf16.msra.mxu1 %v978_v43  ;;  %v4998_v36 = vadd.f32 %v3375_v22, %v1341_v37 }
 0x336   :  { %v3781_v53 = vpop.f32.mrf.mxu0  ;;  %3737 = vmatprep.subr.bf16.mxu1 %v4572_v4  ;;  %vm1372_vm11 = vcmp.gt.f32.partialorder %v4989_v44, 14.0 }
 0x337   :  { %4084 = vpow2.f32 %v1380_v47  ;;  %v1378_v57 = vmul.f32 1.442695, %v1366_v48  ;;  %v1369_v59 = vmin.f32 %v4996_v51, 14.0  ;;  %v5003_v33 = vmul.f32 0.5, %v4998_v36 }
 0x338   :  { %v5005_v61 = vadd.f32 %v3781_v53, %v3375_v22  ;;  %v1351_v62 = vpop.f32.mrf.mxu0  ;;  %vm1375_vm12 = vcmp.gt.f32.partialorder %v4996_v51, 14.0 }
 0x339   :  { %4086 = vpow2.f32 %v1378_v57  ;;  %v1384_v0 = vmul.f32 1.442695, %v1369_v59  ;;  %v5009_v1 = vadd.f32 %v3375_v22, %v1351_v62  ;;  %3738 = vmatpush3.bf16.msra.mxu1 %v977_v56  ;;  %v1368_v2 = vmin.f32 %v5003_v33, 14.0 }
 0x33a   :  { %v5013_v3 = vmul.f32 0.5, %v5005_v61  ;;  %3743 = vmatprep.subr.mxu1 %v1033_v60  ;;  %vm1374_vm13 = vcmp.gt.f32.partialorder %v5003_v33, 14.0 }
 0x33b   :  { %4088 = vpow2.f32 %v1384_v0  ;;  %v5016_v5 = vmul.f32 0.5, %v5009_v1  ;;  %v1382_v8 = vmul.f32 1.442695, %v1368_v2  ;;  %v1145_v0 = vld [vmem:[#allocation22 + $0x18] sm:$0xff]  ;;  %v1143_v2 = vld [vmem:[#allocation22 + $0x8] sm:$0xff] }
 0x33c   :  { %v1371_v11 = vmin.f32 %v5013_v3, 14.0  ;;  %3740 = vmatmul.mubr.msk.bf16.vlgmr.msra.gmra.mxu1 %vm985_vm9, %v5007_v63  ;;  %vm1377_vm14 = vcmp.gt.f32.partialorder %v5013_v3, 14.0  ;;  %v1142_v3 = vld [vmem:[#allocation22] sm:$0xff] }
 0x33d   :  { %v1370_v12 = vmin.f32 %v5016_v5, 14.0  ;;  %3744 = vmatpush3.msra.mxu1 %v1033_v60  ;;  %4090 = vpow2.f32 %v1382_v8  ;;  %vm1376_vm15 = vcmp.gt.f32.partialorder %v5016_v5, 14.0  ;;  %v3385_v5 = vld [vmem:[%s5392_s6 + $0x38] sm:$0xff] }
 0x33e   :  { %v1388_v15 = vmul.f32 1.442695, %v1371_v11  ;;  %3745 = vmatprep.subr.mxu1 %v1032_v6 }
 0x33f   :  { %v1386_v16 = vmul.f32 1.442695, %v1370_v12  ;;  %3746 = vmatpush3.msra.mxu1 %v1032_v6  ;;  %v3369_v6 = vld [vmem:[#allocation20] ss:$0 sm:$0xff] }
 0x340   :  { %4092 = vpow2.f32 %v1388_v15 }
 0x341   :  { %4094 = vpow2.f32 %v1386_v16 }
 0x344   :  { %v4085_v13 = vpop.eup %4084 }
 0x345   :  { %v1391_v17 = vadd.f32 1.0, %v4085_v13 }
 0x346   :  { %v4087_v20 = vpop.eup %4086 }
 0x347   :  { %4096 = vlog2.f32 %v1391_v17  ;;  %v1390_v9 = vadd.f32 1.0, %v4087_v20 }
 0x348   :  { %v4089_v7 = vpop.eup %4088 }
 0x349   :  { %4098 = vlog2.f32 %v1390_v9  ;;  %v1393_v10 = vadd.f32 1.0, %v4089_v7 }
 0x34a   :  { %v4091_v21 = vpop.eup %4090 }
 0x34b   :  { %4100 = vlog2.f32 %v1393_v10  ;;  %v1392_v22 = vadd.f32 1.0, %v4091_v21 }
 0x34d   :  { %v4093_v25 = vpop.eup %4092  ;;  %4102 = vlog2.f32 %v1392_v22 }
 0x34e   :  { %v4095_v18 = vpop.eup %4094  ;;  %v1395_v19 = vadd.f32 1.0, %v4093_v25 }
 0x34f   :  { %v1394_v23 = vadd.f32 1.0, %v4095_v18 }
 0x350   :  { %4104 = vlog2.f32 %v1395_v19 }
 0x351   :  { %4106 = vlog2.f32 %v1394_v23 }
 0x354   :  { %v4097_v24 = vpop.eup %4096 }
 0x355   :  { %v1399_v26 = vmul.f32 0.6931472, %v4097_v24 }
 0x356   :  { %v4099_v28 = vpop.eup %4098 }
 0x357   :  { %v1409_v29 = vmul.f32 2.0, %v1399_v26  ;;  %v1397_v31 = vmul.f32 0.6931472, %v4099_v28 }
 0x358   :  { %v4101_v34 = vpop.eup %4100 }
 0x359   :  { %v1408_v35 = vmul.f32 2.0, %v1397_v31  ;;  %v1403_v41 = vmul.f32 0.6931472, %v4101_v34  ;;  %v1415_v42 = vsel %vm1373_vm10, %v4977_v30, %v1409_v29  ;;  %v3384_v34 = vld [vmem:[%s5392_s6 + $0x30] sm:$0xff] }
 0x35a   :  { %v4103_v43 = vpop.eup %4102 }
 0x35b   :  { %v1414_v40 = vsel %vm1372_vm11, %v4983_v39, %v1408_v35  ;;  %v1411_v37 = vmul.f32 2.0, %v1403_v41  ;;  %v1401_v46 = vmul.f32 0.6931472, %v4103_v43  ;;  %v3383_v35 = vld [vmem:[%s5392_s6 + $0x28] sm:$0xff]  ;;  %v3382_v41 = vld [vmem:[%s5392_s6 + $0x20] sm:$0xff]  ;;  %v3803_v43 = vpop.f32.mrf.mxu0 }
 0x35c   :  { %3835 = vmatprep.mubr.msk.f32.mxu0 %vm368_vm0, %v1414_v40 }
 0x35d   :  { %v4105_v47 = vpop.eup %4104  ;;  %3836 = vmatmul.mubr.msk.f32.vlgmr.msra.gmra.mxu0 %vm368_vm0, %v1415_v42  ;;  %v1410_v44 = vmul.f32 2.0, %v1401_v46  ;;  %v1417_v53 = vsel %vm1375_vm12, %v4991_v45, %v1411_v37  ;;  %v1031_v45 = vld [vmem:[#allocation19 + $0x8] sm:$0xff]  ;;  %v5058_v42 = vld [vmem:[#allocation13 + $0x38] sm:$0xff]  ;;  %v1593_v40 = vpop.f32.mrf.mxu0 }
 0x35e   :  { %v4107_v38 = vpop.eup %4106  ;;  %v1407_v48 = vmul.f32 0.6931472, %v4105_v47  ;;  %3747 = vmatprep.subr.mxu1 %v1031_v45  ;;  %v3389_v46 = vld [vmem:[#allocation11 + $0x1] ss:$0 sm:$0xff] }
 0x35f   :  { %v1405_v30 = vmul.f32 0.6931472, %v4107_v38  ;;  %v1416_v39 = vsel %vm1374_vm13, %v4998_v36, %v1410_v44  ;;  %3748 = vmatpush3.msra.mxu1 %v1031_v45  ;;  %v1030_v36 = vld [vmem:[#allocation19] sm:$0xff]  ;;  %v3806_v37 = vpop.f32.mrf.mxu0  ;;  %v5061_v47 = vadd.f32 %v3389_v46, %v1593_v40 }
 0x360   :  { %v1413_v51 = vmul.f32 2.0, %v1407_v48  ;;  %3838 = vmatprep.mubr.msk.f32.mxu0 %vm368_vm0, %v1416_v39  ;;  %3749 = vmatprep.subr.mxu1 %v1030_v36 }
 0x361   :  { %v1412_v56 = vmul.f32 2.0, %v1405_v30  ;;  %3839 = vmatmul.mubr.msk.f32.gmra.mxu0 %vm368_vm0, %v1417_v53  ;;  %3750 = vmatpush3.msra.mxu1 %v1030_v36  ;;  %v1603_v38 = vpop.f32.mrf.mxu0  ;;  %v5064_v44 = vmul.f32 0.5, %v5061_v47  ;;  %v5066_v53 = vadd.f32 %v3803_v43, %v3389_v46 }
 0x362   :  { %v1419_v59 = vsel %vm1377_vm14, %v5005_v61, %v1413_v51  ;;  %3754 = vmatprep.subr.mxu1 %v1145_v0  ;;  %v5069_v39 = vadd.f32 %v3389_v46, %v1603_v38 }
 0x363   :  { %v1418_v57 = vsel %vm1376_vm15, %v5009_v1, %v1412_v56  ;;  %v1144_v1 = vld [vmem:[#allocation22 + $0x10] sm:$0xff]  ;;  %v3809_v48 = vpop.f32.mrf.mxu0  ;;  %v1628_v30 = vmin.f32 %v5064_v44, 14.0  ;;  %v5072_v56 = vmul.f32 0.5, %v5066_v53  ;;  %vm1634_vm4 = vcmp.gt.f32.partialorder %v5064_v44, 14.0 }
 0x364   :  { %3841 = vmatprep.mubr.msk.f32.mxu0 %vm368_vm0, %v1418_v57  ;;  %v5074_v57 = vadd.f32 %v3806_v37, %v3389_v46  ;;  %v5077_v45 = vmul.f32 0.5, %v5069_v39 }
 0x365   :  { %3842 = vmatmul.mubr.msk.f32.gmra.mxu0 %vm368_vm0, %v1419_v59  ;;  %v1613_v51 = vpop.f32.mrf.mxu0  ;;  %v1640_v59 = vmul.f32 1.442695, %v1628_v30  ;;  %v1685_v30 = vld [vmem:[#allocation13 + $0x30] sm:$0xff]  ;;  %vm1635_vm5 = vcmp.gt.f32.partialorder %v5072_v56, 14.0 }
 0x366   :  { %3864 = vmatprep.mubr.msk.bf16.mxu0 %vm4573_vm1, %v4572_v4  ;;  %v5079_v36 = vadd.f32 %v3389_v46, %v1613_v51  ;;  %vm1636_vm6 = vcmp.gt.f32.partialorder %v5077_v45, 14.0 }
 0x3fc   :  { %v1023_v60 = vpop.f32.mrf.mxu1 }
 0x3fd   :  { %3751 = vmatprep.mubr.msk.f32.mxu1 %vm368_vm0, %v1023_v60  ;;  %v1629_v60 = vmin.f32 %v5072_v56, 14.0 }
 0x3fe   :  { %v3741_v33 = vpop.f32.mrf.mxu1 }
 0x3ff   :  { %v5083_v33 = vmul.f32 0.5, %v5074_v57 }
 0x400   :  { %v1026_v62 = vpop.f32.mrf.mxu1 }
 0x401   :  { %3752 = vmatmul.mubr.msk.f32.vlgmr.msra.gmra.mxu1 %vm368_vm0, %v1026_v62  ;;  %v5085_v62 = vadd.f32 %v3809_v48, %v3389_v46  ;;  %v4205_v46 = vld [vmem:[#allocation2] sm:$0xff]  ;;  %vm1637_vm7 = vcmp.gt.f32.partialorder %v5083_v33, 14.0 }
 0x402   :  { %v3742_v61 = vpop.f32.mrf.mxu1  ;;  %3755 = vmatpush3.msra.mxu1 %v1145_v0  ;;  %v5089_v0 = vmul.f32 0.5, %v5079_v36 }
 0x403   :  { %3756 = vmatprep.subr.mxu1 %v1144_v1  ;;  %v1630_v61 = vmin.f32 %v5077_v45, 14.0 }
 0x404   :  { %3757 = vmatpush3.msra.mxu1 %v1144_v1  ;;  %v1642_v1 = vmul.f32 1.442695, %v1629_v60  ;;  %vm1638_vm10 = vcmp.gt.f32.partialorder %v5089_v0, 14.0 }
 0x405   :  { %3758 = vmatprep.subr.mxu1 %v1143_v2 }
 0x406   :  { %3759 = vmatpush3.msra.mxu1 %v1143_v2  ;;  %v1631_v2 = vmin.f32 %v5083_v33, 14.0 }
 0x407   :  { %3760 = vmatprep.subr.mxu1 %v1142_v3 }
 0x408   :  { %3761 = vmatpush3.msra.mxu1 %v1142_v3  ;;  %v5093_v3 = vmul.f32 0.5, %v5085_v62 }
 0x409   :  { %3782 = vmatprep.subr.mxu1 %v3385_v5 }
 0x40a   :  { %vm1639_vm11 = vcmp.gt.f32.partialorder %v5093_v3, 14.0 }
 0x4c1   :  { %v3753_v8 = vpop.f32.mrf.mxu1 }
 0x4c2   :  { %v1119_v11 = vadd.f32 %v3753_v8, %v3369_v6  ;;  %v1646_v8 = vmul.f32 1.442695, %v1631_v2  ;;  %v1683_v2 = vld [vmem:[#allocation13 + $0x20] sm:$0xff] }
 0x4c3   :  { %v1113_v12 = vpop.f32.mrf.mxu1 }
 0x4c4   :  { %v1123_v15 = vmul.f32 0.5, %v1119_v11  ;;  %v1114_v16 = vadd.f32 %v3369_v6, %v1113_v12  ;;  %v1632_v6 = vmin.f32 %v5089_v0, 14.0  ;;  %v3386_v0 = vld [vmem:[#allocation8 + $0x1] ss:$0 sm:$0xff] }
 0x4c6   :  { %v1125_v13 = vmin.f32 %v1123_v15, 14.0  ;;  %v1122_v17 = vmul.f32 0.5, %v1114_v16  ;;  %vm1127_vm3 = vcmp.gt.f32.partialorder %v1123_v15, 14.0  ;;  %v1648_v12 = vmul.f32 1.442695, %v1632_v6 }
 0x4c8   :  { %v1130_v20 = vmul.f32 1.442695, %v1125_v13  ;;  %v1124_v9 = vmin.f32 %v1122_v17, 14.0  ;;  %vm1126_vm2 = vcmp.gt.f32.partialorder %v1122_v17, 14.0 }
 0x4ca   :  { %4108 = vpow2.f32 %v1130_v20  ;;  %v1128_v7 = vmul.f32 1.442695, %v1124_v9 }
 0x4cc   :  { %4110 = vpow2.f32 %v1128_v7 }
 0x4d7   :  { %v4109_v10 = vpop.eup %4108 }
 0x4d8   :  { %v1133_v21 = vadd.f32 1.0, %v4109_v10 }
 0x4d9   :  { %v4111_v22 = vpop.eup %4110 }
 0x4da   :  { %4112 = vlog2.f32 %v1133_v21  ;;  %v1132_v25 = vadd.f32 1.0, %v4111_v22 }
 0x4dc   :  { %4114 = vlog2.f32 %v1132_v25 }
 0x4dd   :  { %4116 = vpow2.f32 %v1640_v59 }
 0x4de   :  { %4118 = vpow2.f32 %v1642_v1  ;;  %v1684_v1 = vld [vmem:[#allocation13 + $0x28] sm:$0xff] }
 0x4e7   :  { %v4113_v18 = vpop.eup %4112 }
 0x4e8   :  { %v1137_v19 = vmul.f32 0.6931472, %v4113_v18 }
 0x4e9   :  { %v4115_v23 = vpop.eup %4114 }
 0x4ea   :  { %v1135_v24 = vmul.f32 0.6931472, %v4115_v23  ;;  %v1139_v26 = vmul.f32 2.0, %v1137_v19 }
 0x4ec   :  { %v1138_v28 = vmul.f32 2.0, %v1135_v24  ;;  %v1141_v31 = vsel %vm1127_vm3, %v1119_v11, %v1139_v26  ;;  %v1633_v11 = vmin.f32 %v5093_v3, 14.0  ;;  %v3372_v24 = vld [vmem:[#allocation23] ss:$0 sm:$0xff] }
 0x4ee   :  { %v1140_v29 = vsel %vm1126_vm2, %v1114_v16, %v1138_v28  ;;  %v1650_v15 = vmul.f32 1.442695, %v1633_v11  ;;  %v4117_v16 = vpop.eup %4116 }
 0x4ef   :  { %3762 = vmatprep.mubr.msk.f32.mxu1 %vm368_vm0, %v1140_v29  ;;  %v1652_v13 = vadd.f32 1.0, %v4117_v16  ;;  %v4119_v17 = vpop.eup %4118 }
 0x4f0   :  { %3763 = vmatmul.mubr.msk.f32.vlgmr.msra.gmra.mxu1 %vm368_vm0, %v1141_v31  ;;  %v1653_v9 = vadd.f32 1.0, %v4119_v17 }
 0x4f1   :  { %3783 = vmatpush3.msra.mxu1 %v3385_v5  ;;  %v1644_v5 = vmul.f32 1.442695, %v1630_v61 }
 0x4f2   :  { %3784 = vmatprep.subr.mxu1 %v3384_v34 }
 0x4f3   :  { %3785 = vmatpush3.msra.mxu1 %v3384_v34  ;;  %4120 = vpow2.f32 %v1644_v5  ;;  %v4204_v34 = vld [vmem:[#allocation2 + $0x8] sm:$0xff] }
 0x4f4   :  { %3786 = vmatprep.subr.mxu1 %v3383_v35  ;;  %4122 = vpow2.f32 %v1646_v8 }
 0x4f5   :  { %3787 = vmatpush3.msra.mxu1 %v3383_v35  ;;  %4124 = vpow2.f32 %v1648_v12 }
 0x4f6   :  { %3788 = vmatprep.subr.mxu1 %v3382_v41  ;;  %4126 = vpow2.f32 %v1650_v15 }
 0x4f7   :  { %3789 = vmatpush3.msra.mxu1 %v3382_v41  ;;  %4128 = vlog2.f32 %v1652_v13 }
 0x4f8   :  { %3810 = vmatprep.subr.mxu1 %v5058_v42  ;;  %4130 = vlog2.f32 %v1653_v9 }
 0x500   :  { %v4121_v20 = vpop.eup %4120 }
 0x501   :  { %v4123_v7 = vpop.eup %4122  ;;  %v1654_v10 = vadd.f32 1.0, %v4121_v20 }
 0x502   :  { %v4125_v21 = vpop.eup %4124  ;;  %v1655_v22 = vadd.f32 1.0, %v4123_v7 }
 0x503   :  { %v4127_v25 = vpop.eup %4126  ;;  %4132 = vlog2.f32 %v1654_v10  ;;  %v1656_v18 = vadd.f32 1.0, %v4125_v21  ;;  %v3837_v10 = vpop.f32.mrf.mxu0 }
 0x504   :  { %4134 = vlog2.f32 %v1655_v22  ;;  %v1657_v19 = vadd.f32 1.0, %v4127_v25  ;;  %v4129_v23 = vpop.eup %4128 }
 0x505   :  { %4136 = vlog2.f32 %v1656_v18  ;;  %v1659_v28 = vmul.f32 0.6931472, %v4129_v23  ;;  %v4131_v43 = vpop.eup %4130  ;;  %v1905_v22 = vpop.f32.mrf.mxu0 }
 0x506   :  { %4138 = vlog2.f32 %v1657_v19  ;;  %v1661_v48 = vmul.f32 0.6931472, %v4131_v43 }
 0x507   :  { %v1670_v40 = vmul.f32 2.0, %v1659_v28  ;;  %v3840_v19 = vpop.f32.mrf.mxu0 }
 0x508   :  { %v1671_v44 = vmul.f32 2.0, %v1661_v48 }
 0x509   :  { %v1676_v59 = vsel %vm1634_vm4, %v5061_v47, %v1670_v40 }
 0x50a   :  { %v1677_v47 = vsel %vm1635_vm5, %v5066_v53, %v1671_v44 }
 0x510   :  { %v4133_v37 = vpop.eup %4132 }
 0x511   :  { %v4135_v51 = vpop.eup %4134  ;;  %v1663_v60 = vmul.f32 0.6931472, %v4133_v37  ;;  %v3403_v37 = vld [vmem:[#allocation17 + $0x1] ss:$0 sm:$0xff] }
 0x512   :  { %v4137_v61 = vpop.eup %4136  ;;  %v1665_v5 = vmul.f32 0.6931472, %v4135_v51 }
 0x513   :  { %v4139_v6 = vpop.eup %4138  ;;  %v1672_v8 = vmul.f32 2.0, %v1663_v60  ;;  %v1667_v11 = vmul.f32 0.6931472, %v4137_v61 }
 0x514   :  { %v1669_v12 = vmul.f32 0.6931472, %v4139_v6 }
 0x515   :  { %v1678_v15 = vsel %vm1636_vm6, %v5069_v39, %v1672_v8  ;;  %v1674_v16 = vmul.f32 2.0, %v1667_v11 }
 0x516   :  { %v1675_v56 = vmul.f32 2.0, %v1669_v12 }
 0x517   :  { %v1680_v45 = vsel %vm1638_vm10, %v5079_v36, %v1674_v16 }
 0x518   :  { %v1681_v39 = vsel %vm1639_vm11, %v5085_v62, %v1675_v56  ;;  %v1911_v56 = vadd.f32 %v3837_v10, %v3403_v37 }
 0x5b0   :  { %v3764_v26 = vpop.f32.mrf.mxu1 }
 0x5b1   :  { %v1231_v29 = vadd.f32 %v3764_v26, %v3372_v24 }
 0x5b2   :  { %v1225_v31 = vpop.f32.mrf.mxu1 }
 0x5b3   :  { %v5097_v35 = vadd.f32 %v4204_v34, %v1231_v29  ;;  %v1226_v41 = vadd.f32 %v3372_v24, %v1225_v31  ;;  %v1915_v24 = vpop.f32.mrf.mxu0 }
 0x5b5   :  { %v5099_v38 = vadd.f32 %v4205_v46, %v1226_v41  ;;  %3284 = vrot.lane.b32.xlu1 %v5097_v35, %s4574_s8  ;;  %v3843_v29 = vpop.f32.mrf.mxu0 }
 0x5b6   :  { %v5139_v51 = vadd.f32 %v3843_v29, %v3403_v37  ;;  %v3414_v29 = vld [vmem:[#allocation20 + $0x1] ss:$0 sm:$0xff] }
 0x5b7   :  { %3282 = vrot.lane.b32.xlu0 %v5099_v38, %s4574_s8  ;;  %3790 = vmatprep.mubr.msk.f32.mxu1 %vm368_vm0, %v5099_v38  ;;  %v1925_v43 = vpop.f32.mrf.mxu0 }
 0x5b8   :  { %3791 = vmatmul.mubr.msk.f32.vlgmr.msra.gmra.mxu1 %vm368_vm0, %v5097_v35  ;;  %v5141_v60 = vadd.f32 %v3403_v37, %v1925_v43 }
 0x5b9   :  { %3811 = vmatpush3.msra.mxu1 %v5058_v42  ;;  %3818 = vmatprep.mubr.msk.f32.mxu1 %vm368_vm0, %v1676_v59  ;;  %v1673_v42 = vmul.f32 2.0, %v1665_v5 }
 0x5ba   :  { %3812 = vmatprep.subr.mxu1 %v1685_v30 }
 0x5bb   :  { %3813 = vmatpush3.msra.mxu1 %v1685_v30  ;;  %v1679_v53 = vsel %vm1637_vm7, %v5074_v57, %v1673_v42  ;;  %v1916_v42 = vadd.f32 %v3403_v37, %v1915_v24  ;;  %v2166_v24 = vld [vmem:[#allocation22 + $0x38] sm:$0xff] }
 0x5bc   :  { %3814 = vmatprep.subr.mxu1 %v1684_v1 }
 0x5bd   :  { %3815 = vmatpush3.msra.mxu1 %v1684_v1 }
 0x5be   :  { %3816 = vmatprep.subr.mxu1 %v1683_v2 }
 0x5bf   :  { %3817 = vmatpush3.msra.mxu1 %v1683_v2  ;;  %v5143_v2 = vadd.f32 %v3840_v19, %v3403_v37  ;;  %v2541_v19 = vld [vmem:[#allocation10 + $0x50] sm:$0xff] }
 0x5c0   :  { %3819 = vmatmul.mubr.msk.f32.vlgmr.msra.gmra.mxu1 %vm368_vm0, %v1677_v47  ;;  %3844 = vmatprep.subr.bf16.mxu1 %v4572_v4 }
 0x5c1   :  { %3821 = vmatprep.mubr.msk.f32.mxu1 %vm368_vm0, %v1678_v15 }
 0x5c4   :  { %3822 = vmatmul.mubr.msk.f32.gmra.mxu1 %vm368_vm0, %v1679_v53 }
 0x5c5   :  { %3824 = vmatprep.mubr.msk.f32.mxu1 %vm368_vm0, %v1680_v45 }
 0x5c8   :  { %3825 = vmatmul.mubr.msk.f32.gmra.mxu1 %vm368_vm0, %v1681_v39 }
 0x5c9   :  { %3846 = vmatprep.mubr.msk.bf16.mxu1 %vm4573_vm1, %v4572_v4 }
 0x678   :  { %v3792_v33 = vpop.f32.mrf.mxu1 }
 0x679   :  { %v1511_v57 = vadd.f32 %v3792_v33, %v3386_v0  ;;  %v1906_v33 = vadd.f32 %v3403_v37, %v1905_v22  ;;  %v3421_v22 = vld [vmem:[%s5404_s18 + $0x28] sm:$0xff] }
 0x67a   :  { %v1505_v13 = vpop.f32.mrf.mxu1 }
 0x67b   :  { %v1506_v17 = vadd.f32 %v3386_v0, %v1505_v13 }
 0x67d   :  { %v1934_v20 = vpack.c.bf16 %v1511_v57, %v1506_v17 }
 0x67f   :  { %3845 = vmatpush3.bf16.msra.mxu1 %v1934_v20  ;;  %v2052_v20 = vld [vmem:[#allocation19 + $0x38] sm:$0xff] }
 0x680   :  { %v3820_v36 = vpop.f32.mrf.mxu1  ;;  %3879 = vmatprep.subr.mxu1 %v2166_v24 }
 0x682   :  { %3847 = vmatmul.mubr.msk.bf16.vlgmr.msra.gmra.mxu1 %vm898_vm8, %v4912_v14  ;;  %v1779_v62 = vpop.f32.mrf.mxu1 }
 0x683   :  { %3850 = vmatprep.mubr.msk.bf16.mxu1 %vm4573_vm1, %v4572_v4  ;;  %3880 = vmatpush3.msra.mxu1 %v2166_v24 }
 0x684   :  { %v3823_v3 = vpop.f32.mrf.mxu1 }
 0x686   :  { %v1789_v9 = vpop.f32.mrf.mxu1 }
 0x688   :  { %v3826_v7 = vpop.f32.mrf.mxu1 }
 0x68a   :  { %3851 = vmatmul.mubr.msk.bf16.gmra.mxu1 %vm898_vm8, %v4932_v27  ;;  %v1799_v21 = vpop.f32.mrf.mxu1 }
 0x68b   :  { %3854 = vmatprep.mubr.msk.bf16.mxu1 %vm4573_vm1, %v4572_v4 }
 0x692   :  { %3855 = vmatmul.mubr.msk.bf16.gmra.mxu1 %vm898_vm8, %v4941_v32  ;;  %v3396_v32 = vld [vmem:[#allocation14 + $0x1] ss:$0 sm:$0xff] }
 0x693   :  { %v1800_v41 = vadd.f32 %v3396_v32, %v1799_v21  ;;  %v1795_v46 = vadd.f32 %v3823_v3, %v3396_v32  ;;  %v1805_v48 = vadd.f32 %v3826_v7, %v3396_v32  ;;  %v1790_v61 = vadd.f32 %v3396_v32, %v1789_v9  ;;  %v2049_v3 = vld [vmem:[#allocation19 + $0x20] sm:$0xff]  ;;  %v3423_v9 = vld [vmem:[%s5404_s18 + $0x38] sm:$0xff] }
 0x694   :  { %v1785_v6 = vadd.f32 %v3820_v36, %v3396_v32  ;;  %v1780_v12 = vadd.f32 %v3396_v32, %v1779_v62  ;;  %v2051_v36 = vld [vmem:[#allocation19 + $0x30] sm:$0xff]  ;;  %v2050_v62 = vld [vmem:[#allocation19 + $0x28] sm:$0xff] }
 0x742   :  { %v1969_v14 = vpop.f32.mrf.mxu1 }
 0x743   :  { %v1992_v45 = vmul.f32 %v1969_v14, %v1780_v12 }
 0x744   :  { %v3848_v25 = vpop.f32.mrf.mxu1 }
 0x745   :  { %v1998_v57 = vadd.f32 %v1992_v45, %v1906_v33  ;;  %v3420_v25 = vld [vmem:[%s5404_s18 + $0x20] sm:$0xff] }
 0x746   :  { %v1972_v18 = vpop.f32.mrf.mxu1 }
 0x747   :  { %v1993_v15 = vmul.f32 %v1972_v18, %v1785_v6  ;;  %v2542_v18 = vld [vmem:[#allocation10 + $0x58] sm:$0xff] }
 0x748   :  { %v3849_v23 = vpop.f32.mrf.mxu1 }
 0x749   :  { %v1999_v0 = vadd.f32 %v1993_v15, %v1911_v56  ;;  %v2540_v23 = vld [vmem:[#allocation10 + $0x48] sm:$0xff] }
 0x74a   :  { %v1977_v27 = vpop.f32.mrf.mxu1 }
 0x74b   :  { %v1994_v8 = vmul.f32 %v1977_v27, %v1790_v61  ;;  %v2004_v17 = vpack.c.bf16 %v1999_v0, %v1998_v57  ;;  %v2539_v27 = vld [vmem:[#allocation10 + $0x40] sm:$0xff] }
 0x74c   :  { %v3852_v26 = vpop.f32.mrf.mxu1 }
 0x74d   :  { %v2000_v39 = vadd.f32 %v1994_v8, %v1916_v42  ;;  %v2165_v26 = vld [vmem:[#allocation22 + $0x30] sm:$0xff] }
 0x74e   :  { %v1980_v28 = vpop.f32.mrf.mxu1  ;;  %3881 = vmatprep.subr.mxu1 %v2165_v26 }
 0x74f   :  { %v1995_v1 = vmul.f32 %v1980_v28, %v1795_v46  ;;  %3882 = vmatpush3.msra.mxu1 %v2165_v26  ;;  %v5191_v28 = vld [vmem:[%s5392_s6 + $0x58] sm:$0xff]  ;;  %v3424_v46 = vld [vmem:[#allocation25 + $0x1] ss:$0 sm:$0xff] }
 0x750   :  { %v3853_v31 = vpop.f32.mrf.mxu1 }
 0x751   :  { %v2001_v16 = vadd.f32 %v1995_v1, %v5143_v2 }
 0x752   :  { %v1985_v34 = vpop.f32.mrf.mxu1 }
 0x753   :  { %v1996_v30 = vmul.f32 %v1985_v34, %v1800_v41  ;;  %v2005_v13 = vpack.c.bf16 %v2001_v16, %v2000_v39 }
 0x754   :  { %v3856_v40 = vpop.f32.mrf.mxu1 }
 0x755   :  { %v2002_v11 = vadd.f32 %v1996_v30, %v5141_v60 }
 0x756   :  { %v1988_v59 = vpop.f32.mrf.mxu1 }
 0x757   :  { %v1997_v44 = vmul.f32 %v1988_v59, %v1805_v48 }
 0x758   :  { %v3857_v5 = vpop.f32.mrf.mxu1 }
 0x759   :  { %v2003_v47 = vadd.f32 %v1997_v44, %v5139_v51 }
 0x75b   :  { %v2006_v53 = vpack.c.bf16 %v2003_v47, %v2002_v11 }
 0x75d   :  { %3859 = vmatpush3.bf16.msra.mxu0 %v2006_v53 }
 0x75e   :  { %3860 = vmatprep.subr.bf16.mxu0 %v4572_v4 }
 0x761   :  { %3861 = vmatpush3.bf16.msra.mxu0 %v2005_v13 }
 0x762   :  { %3862 = vmatprep.subr.bf16.mxu0 %v4572_v4 }
 0x765   :  { %3863 = vmatpush3.bf16.msra.mxu0 %v2004_v17 }
 0x766   :  { %3868 = vmatprep.subr.mxu0 %v2052_v20 }
 0x768   :  { %3865 = vmatmul.mubr.msk.bf16.vlgmr.msra.gmra.mxu0 %vm985_vm9, %v5007_v63  ;;  %v3422_v63 = vld [vmem:[%s5404_s18 + $0x30] sm:$0xff] }
 0x769   :  { %3869 = vmatpush3.msra.mxu0 %v2052_v20 }
 0x76a   :  { %3870 = vmatprep.subr.mxu0 %v2051_v36 }
 0x76b   :  { %3871 = vmatpush3.msra.mxu0 %v2051_v36 }
 0x76c   :  { %3872 = vmatprep.subr.mxu0 %v2050_v62 }
 0x76d   :  { %3873 = vmatpush3.msra.mxu0 %v2050_v62 }
 0x76e   :  { %3874 = vmatprep.subr.mxu0 %v2049_v3 }
 0x76f   :  { %3875 = vmatpush3.msra.mxu0 %v2049_v3 }
 0x770   :  { %3890 = vmatprep.subr.mxu0 %v3423_v9 }
 0x828   :  { %v2041_v7 = vpop.f32.mrf.mxu0 }
 0x829   :  { %3876 = vmatprep.mubr.msk.f32.mxu0 %vm368_vm0, %v2041_v7 }
 0x82a   :  { %v3866_v10 = vpop.f32.mrf.mxu0 }
 0x82c   :  { %v2044_v21 = vpop.f32.mrf.mxu0 }
 0x82d   :  { %3877 = vmatmul.mubr.msk.f32.vlgmr.msra.gmra.mxu0 %vm368_vm0, %v2044_v21 }
 0x82e   :  { %3891 = vmatpush3.msra.mxu0 %v3423_v9  ;;  %v3867_v14 = vpop.f32.mrf.mxu0  ;;  %3898 = vmatprep.mubr.msk.f32.mxu0 %vm368_vm0, %v1906_v33 }
 0x82f   :  { %3892 = vmatprep.subr.mxu0 %v3422_v63 }
 0x830   :  { %3893 = vmatpush3.msra.mxu0 %v3422_v63 }
 0x831   :  { %3894 = vmatprep.subr.mxu0 %v3421_v22 }
 0x832   :  { %3895 = vmatpush3.msra.mxu0 %v3421_v22 }
 0x833   :  { %3896 = vmatprep.subr.mxu0 %v3420_v25 }
 0x834   :  { %3897 = vmatpush3.msra.mxu0 %v3420_v25 }
 0x835   :  { %3899 = vmatmul.mubr.msk.f32.vlgmr.msra.gmra.mxu0 %vm368_vm0, %v1911_v56  ;;  %3918 = vmatprep.subr.mxu0 %v2542_v18 }
 0x836   :  { %3901 = vmatprep.mubr.msk.f32.mxu0 %vm368_vm0, %v1916_v42  ;;  %3919 = vmatpush3.msra.mxu0 %v2542_v18 }
 0x837   :  { %3920 = vmatprep.subr.mxu0 %v2541_v19 }
 0x838   :  { %3921 = vmatpush3.msra.mxu0 %v2541_v19 }
 0x839   :  { %3902 = vmatmul.mubr.msk.f32.gmra.mxu0 %vm368_vm0, %v5143_v2  ;;  %3922 = vmatprep.subr.mxu0 %v2540_v23 }
 0x83a   :  { %3904 = vmatprep.mubr.msk.f32.mxu0 %vm368_vm0, %v5141_v60  ;;  %3923 = vmatpush3.msra.mxu0 %v2540_v23 }
 0x83b   :  { %3924 = vmatprep.subr.mxu0 %v2539_v27 }
 0x83c   :  { %3925 = vmatpush3.msra.mxu0 %v2539_v27 }
 0x83d   :  { %3905 = vmatmul.mubr.msk.f32.gmra.mxu0 %vm368_vm0, %v5139_v51 }
 0x83e   :  { %3926 = vmatprep.mubr.msk.f32.mxu0 %vm368_vm0, %v4800_v49  ;;  %v2164_v49 = vld [vmem:[#allocation22 + $0x28] sm:$0xff] }
 0x83f   :  { %3883 = vmatprep.subr.mxu1 %v2164_v49 }
 0x840   :  { %3884 = vmatpush3.msra.mxu1 %v2164_v49 }
 0x841   :  { %3927 = vmatmul.mubr.msk.f32.vlgmr.msra.gmra.mxu0 %vm368_vm0, %v4804_v50  ;;  %v2163_v50 = vld [vmem:[#allocation22 + $0x20] sm:$0xff] }
 0x842   :  { %3929 = vmatprep.mubr.msk.f32.mxu0 %vm368_vm0, %v4806_v52  ;;  %3885 = vmatprep.subr.mxu1 %v2163_v50  ;;  %v2836_v52 = vld [vmem:[#allocation16 + $0x58] sm:$0xff] }
 0x843   :  { %3886 = vmatpush3.msra.mxu1 %v2163_v50  ;;  %3952 = vmatprep.subr.mxu0 %v2836_v52 }
 0x844   :  { %3953 = vmatpush3.msra.mxu0 %v2836_v52  ;;  %3907 = vmatprep.subr.mxu1 %v5191_v28 }
 0x845   :  { %3930 = vmatmul.mubr.msk.f32.gmra.mxu0 %vm368_vm0, %v4812_v54  ;;  %v2835_v54 = vld [vmem:[#allocation16 + $0x50] sm:$0xff] }
 0x846   :  { %3932 = vmatprep.mubr.msk.f32.mxu0 %vm368_vm0, %v4814_v55  ;;  %3954 = vmatprep.subr.mxu0 %v2835_v54  ;;  %v2834_v55 = vld [vmem:[#allocation16 + $0x48] sm:$0xff] }
 0x847   :  { %3955 = vmatpush3.msra.mxu0 %v2835_v54 }
 0x848   :  { %3956 = vmatprep.subr.mxu0 %v2834_v55 }
 0x849   :  { %3933 = vmatmul.mubr.msk.f32.gmra.mxu0 %vm368_vm0, %v4823_v58  ;;  %v2833_v58 = vld [vmem:[#allocation16 + $0x40] sm:$0xff] }
 0x84a   :  { %3957 = vmatpush3.msra.mxu0 %v2834_v55 }
 0x84b   :  { %3958 = vmatprep.subr.mxu0 %v2833_v58 }
 0x84c   :  { %3959 = vmatpush3.msra.mxu0 %v2833_v58 }
 0x84d   :  { %3983 = vmatprep.subr.bf16.mxu0 %v4572_v4 }
 0x8ed   :  { %v3878_v31 = vpop.f32.mrf.mxu0 }
 0x8ee   :  { %v5194_v32 = vadd.f32 %v3878_v31, %v3414_v29 }
 0x8ef   :  { %v2133_v34 = vpop.f32.mrf.mxu0 }
 0x8f0   :  { %v5197_v41 = vmul.f32 0.5, %v5194_v32  ;;  %v5199_v43 = vadd.f32 %v3414_v29, %v2133_v34 }
 0x8f2   :  { %v2145_v40 = vmin.f32 %v5197_v41, 14.0  ;;  %v5203_v37 = vmul.f32 0.5, %v5199_v43  ;;  %vm2147_vm13 = vcmp.gt.f32.partialorder %v5197_v41, 14.0 }
 0x8f4   :  { %v2150_v48 = vmul.f32 1.442695, %v2145_v40  ;;  %v2144_v30 = vmin.f32 %v5203_v37, 14.0  ;;  %vm2146_vm12 = vcmp.gt.f32.partialorder %v5203_v37, 14.0 }
 0x8f5   :  { %v3900_v51 = vpop.f32.mrf.mxu0 }
 0x8f6   :  { %4140 = vpow2.f32 %v2150_v48  ;;  %v2148_v59 = vmul.f32 1.442695, %v2144_v30  ;;  %v5206_v60 = vadd.f32 %v3900_v51, %v3424_v46 }
 0x8f7   :  { %v2355_v61 = vpop.f32.mrf.mxu0 }
 0x8f8   :  { %4142 = vpow2.f32 %v2148_v59  ;;  %v5209_v1 = vmul.f32 0.5, %v5206_v60  ;;  %v5211_v44 = vadd.f32 %v3424_v46, %v2355_v61 }
 0x8f9   :  { %v3903_v2 = vpop.f32.mrf.mxu0 }
 0x8fa   :  { %v2391_v5 = vmin.f32 %v5209_v1, 14.0  ;;  %v5215_v6 = vmul.f32 0.5, %v5211_v44  ;;  %v5217_v8 = vadd.f32 %v3903_v2, %v3424_v46  ;;  %vm2397_vm15 = vcmp.gt.f32.partialorder %v5209_v1, 14.0 }
 0x8fb   :  { %v2365_v11 = vpop.f32.mrf.mxu0 }
 0x8fc   :  { %v2404_v47 = vmul.f32 1.442695, %v2391_v5  ;;  %v2390_v42 = vmin.f32 %v5215_v6, 14.0  ;;  %v5221_v12 = vmul.f32 0.5, %v5217_v8  ;;  %v5223_v15 = vadd.f32 %v3424_v46, %v2365_v11 }
 0x8fd   :  { %v3906_v16 = vpop.f32.mrf.mxu0  ;;  %vm2396_vm14 = vcmp.gt.f32.partialorder %v5215_v6, 14.0 }
 0x8fe   :  { %4144 = vpow2.f32 %v2404_v47  ;;  %v2402_v53 = vmul.f32 1.442695, %v2390_v42  ;;  %v2393_v56 = vmin.f32 %v5221_v12, 14.0  ;;  %v5227_v45 = vmul.f32 0.5, %v5223_v15 }
 0x8ff   :  { %v5229_v39 = vadd.f32 %v3906_v16, %v3424_v46  ;;  %v2375_v33 = vpop.f32.mrf.mxu0  ;;  %vm2399_vm3 = vcmp.gt.f32.partialorder %v5221_v12, 14.0 }
 0x900   :  { %4146 = vpow2.f32 %v2402_v53  ;;  %v2408_v0 = vmul.f32 1.442695, %v2393_v56  ;;  %v5231_v13 = vadd.f32 %v3424_v46, %v2375_v33  ;;  %v2392_v57 = vmin.f32 %v5227_v45, 14.0 }
 0x901   :  { %v5235_v17 = vmul.f32 0.5, %v5229_v39  ;;  %vm2398_vm2 = vcmp.gt.f32.partialorder %v5227_v45, 14.0  ;;  %v3431_v45 = vld [vmem:[%s5392_s6 + $0x40] sm:$0xff] }
 0x902   :  { %4148 = vpow2.f32 %v2408_v0  ;;  %v5238_v20 = vmul.f32 0.5, %v5231_v13  ;;  %v2406_v62 = vmul.f32 1.442695, %v2392_v57 }
 0x903   :  { %v4141_v36 = vpop.eup %4140  ;;  %v2395_v3 = vmin.f32 %v5235_v17, 14.0  ;;  %vm2401_vm5 = vcmp.gt.f32.partialorder %v5235_v17, 14.0 }
 0x904   :  { %v2153_v9 = vadd.f32 1.0, %v4141_v36  ;;  %v2394_v7 = vmin.f32 %v5238_v20, 14.0  ;;  %4150 = vpow2.f32 %v2406_v62  ;;  %vm2400_vm4 = vcmp.gt.f32.partialorder %v5238_v20, 14.0  ;;  %v3438_v20 = vld [vmem:[#allocation11 + $0x2] ss:$0 sm:$0xff] }
 0x905   :  { %v4143_v10 = vpop.eup %4142  ;;  %v2412_v21 = vmul.f32 1.442695, %v2395_v3 }
 0x906   :  { %4152 = vlog2.f32 %v2153_v9  ;;  %v2152_v63 = vadd.f32 1.0, %v4143_v10  ;;  %v2410_v14 = vmul.f32 1.442695, %v2394_v7 }
 0x907   :  { %4154 = vpow2.f32 %v2412_v21 }
 0x908   :  { %4156 = vlog2.f32 %v2152_v63 }
 0x909   :  { %4158 = vpow2.f32 %v2410_v14 }
 0x90b   :  { %v4145_v22 = vpop.eup %4144 }
 0x90c   :  { %v2415_v25 = vadd.f32 1.0, %v4145_v22 }
 0x90d   :  { %v4147_v18 = vpop.eup %4146 }
 0x90e   :  { %4160 = vlog2.f32 %v2415_v25  ;;  %v2414_v19 = vadd.f32 1.0, %v4147_v18 }
 0x90f   :  { %v4149_v23 = vpop.eup %4148 }
 0x910   :  { %4162 = vlog2.f32 %v2414_v19  ;;  %v2417_v27 = vadd.f32 1.0, %v4149_v23 }
 0x911   :  { %v4151_v24 = vpop.eup %4150 }
 0x912   :  { %4164 = vlog2.f32 %v2417_v27  ;;  %v2416_v49 = vadd.f32 1.0, %v4151_v24 }
 0x913   :  { %v4153_v26 = vpop.eup %4152 }
 0x914   :  { %v4155_v50 = vpop.eup %4154  ;;  %v2157_v52 = vmul.f32 0.6931472, %v4153_v26  ;;  %4166 = vlog2.f32 %v2416_v49 }
 0x915   :  { %v4157_v54 = vpop.eup %4156  ;;  %v2419_v55 = vadd.f32 1.0, %v4155_v50 }
 0x916   :  { %v4159_v58 = vpop.eup %4158  ;;  %v2155_v29 = vmul.f32 0.6931472, %v4157_v54  ;;  %v2159_v31 = vmul.f32 2.0, %v2157_v52 }
 0x917   :  { %4168 = vlog2.f32 %v2419_v55  ;;  %v2418_v34 = vadd.f32 1.0, %v4159_v58 }
 0x918   :  { %v2158_v40 = vmul.f32 2.0, %v2155_v29  ;;  %v2161_v30 = vsel %vm2147_vm13, %v5194_v32, %v2159_v31 }
 0x919   :  { %4170 = vlog2.f32 %v2418_v34 }
 0x91a   :  { %v2160_v46 = vsel %vm2146_vm12, %v5199_v43, %v2158_v40 }
 0x91b   :  { %v4161_v48 = vpop.eup %4160  ;;  %3887 = vmatprep.mubr.msk.f32.mxu1 %vm368_vm0, %v2160_v46 }
 0x91c   :  { %v2423_v51 = vmul.f32 0.6931472, %v4161_v48  ;;  %3888 = vmatmul.mubr.msk.f32.vlgmr.msra.gmra.mxu1 %vm368_vm0, %v2161_v30 }
 0x91d   :  { %v4163_v59 = vpop.eup %4162  ;;  %3908 = vmatpush3.msra.mxu1 %v5191_v28 }
 0x91e   :  { %v2421_v61 = vmul.f32 0.6931472, %v4163_v59  ;;  %v2433_v5 = vmul.f32 2.0, %v2423_v51 }
 0x91f   :  { %v4165_v2 = vpop.eup %4164 }
 0x920   :  { %v2432_v37 = vmul.f32 2.0, %v2421_v61  ;;  %v2427_v11 = vmul.f32 0.6931472, %v4165_v2  ;;  %v2439_v43 = vsel %vm2397_vm15, %v5206_v60, %v2433_v5 }
 0x921   :  { %v4167_v41 = vpop.eup %4166 }
 0x922   :  { %v2438_v32 = vsel %vm2396_vm14, %v5211_v44, %v2432_v37  ;;  %v2425_v47 = vmul.f32 0.6931472, %v4167_v41  ;;  %v2435_v28 = vmul.f32 2.0, %v2427_v11  ;;  %vm3307_vm14 = vcmask 785408  }
 0x923   :  { %3960 = vmatprep.mubr.msk.f32.mxu0 %vm368_vm0, %v2438_v32 }
 0x924   :  { %v4169_v42 = vpop.eup %4168  ;;  %3961 = vmatmul.mubr.msk.f32.vlgmr.msra.gmra.mxu0 %vm368_vm0, %v2439_v43  ;;  %v2434_v16 = vmul.f32 2.0, %v2425_v47  ;;  %v2441_v60 = vsel %vm2399_vm3, %v5217_v8, %v2435_v28  ;;  %v3433_v8 = vld [vmem:[%s5392_s6 + $0x50] sm:$0xff]  ;;  %v3417_v47 = vld [vmem:[#allocation23 + $0x1] ss:$0 sm:$0xff] }
 0x925   :  { %v2431_v53 = vmul.f32 0.6931472, %v4169_v42  ;;  %3909 = vmatprep.subr.mxu1 %v3433_v8 }
 0x926   :  { %v4171_v56 = vpop.eup %4170  ;;  %v2440_v1 = vsel %vm2398_vm2, %v5223_v15, %v2434_v16  ;;  %3910 = vmatpush3.msra.mxu1 %v3433_v8  ;;  %v3432_v15 = vld [vmem:[%s5392_s6 + $0x48] sm:$0xff] }
 0x927   :  { %v2429_v6 = vmul.f32 0.6931472, %v4171_v56  ;;  %3963 = vmatprep.mubr.msk.f32.mxu0 %vm368_vm0, %v2440_v1  ;;  %v2437_v44 = vmul.f32 2.0, %v2431_v53  ;;  %3911 = vmatprep.subr.mxu1 %v3432_v15 }
 0x928   :  { %3964 = vmatmul.mubr.msk.f32.gmra.mxu0 %vm368_vm0, %v2441_v60  ;;  %3912 = vmatpush3.msra.mxu1 %v3432_v15 }
 0x929   :  { %v2436_v33 = vmul.f32 2.0, %v2429_v6  ;;  %v2443_v12 = vsel %vm2401_vm5, %v5229_v39, %v2437_v44  ;;  %v5278_v39 = vld [vmem:[#allocation13 + $0x58] sm:$0xff]  ;;  %3913 = vmatprep.subr.mxu1 %v3431_v45 }
 0x92a   :  { %3914 = vmatpush3.msra.mxu1 %v3431_v45  ;;  %v2708_v45 = vld [vmem:[#allocation13 + $0x48] sm:$0xff] }
 0x92b   :  { %v2442_v0 = vsel %vm2400_vm4, %v5231_v13, %v2436_v33  ;;  %3935 = vmatprep.subr.mxu1 %v5278_v39  ;;  %v3928_v13 = vpop.f32.mrf.mxu0 }
 0x92c   :  { %3966 = vmatprep.mubr.msk.f32.mxu0 %vm368_vm0, %v2442_v0  ;;  %v5286_v7 = vadd.f32 %v3928_v13, %v3438_v20 }
 0x92d   :  { %3967 = vmatmul.mubr.msk.f32.gmra.mxu0 %vm368_vm0, %v2443_v12  ;;  %v2617_v57 = vpop.f32.mrf.mxu0 }
 0x92e   :  { %3989 = vmatprep.mubr.msk.bf16.mxu0 %vm4573_vm1, %v4572_v4  ;;  %v5281_v36 = vadd.f32 %v3438_v20, %v2617_v57  ;;  %v5292_v14 = vmul.f32 0.5, %v5286_v7  ;;  %v2707_v57 = vld [vmem:[#allocation13 + $0x40] sm:$0xff] }
 0x92f   :  { %v3931_v17 = vpop.f32.mrf.mxu0 }
 0x930   :  { %v5284_v3 = vmul.f32 0.5, %v5281_v36  ;;  %v5294_v22 = vadd.f32 %v3931_v17, %v3438_v20  ;;  %v2653_v23 = vmin.f32 %v5292_v14, 14.0  ;;  %vm2659_vm7 = vcmp.gt.f32.partialorder %v5292_v14, 14.0 }
 0x931   :  { %v2627_v62 = vpop.f32.mrf.mxu0 }
 0x932   :  { %v2652_v10 = vmin.f32 %v5284_v3, 14.0  ;;  %v5289_v21 = vadd.f32 %v3438_v20, %v2627_v62  ;;  %v5303_v27 = vmul.f32 0.5, %v5294_v22  ;;  %v2666_v50 = vmul.f32 1.442695, %v2653_v23  ;;  %v3435_v23 = vld [vmem:[#allocation8 + $0x2] ss:$0 sm:$0xff] }
 0x933   :  { %v3934_v9 = vpop.f32.mrf.mxu0  ;;  %vm2658_vm6 = vcmp.gt.f32.partialorder %v5284_v3, 14.0 }
 0x934   :  { %v2664_v25 = vmul.f32 1.442695, %v2652_v10  ;;  %v5297_v18 = vmul.f32 0.5, %v5289_v21  ;;  %v5305_v24 = vadd.f32 %v3934_v9, %v3438_v20  ;;  %v2655_v52 = vmin.f32 %v5303_v27, 14.0 }
 0x935   :  { %v2637_v63 = vpop.f32.mrf.mxu0  ;;  %vm2661_vm11 = vcmp.gt.f32.partialorder %v5303_v27, 14.0 }
 0x936   :  { %v5299_v19 = vadd.f32 %v3438_v20, %v2637_v63  ;;  %4172 = vpow2.f32 %v2664_v25  ;;  %v2654_v26 = vmin.f32 %v5297_v18, 14.0  ;;  %v5313_v54 = vmul.f32 0.5, %v5305_v24 }
 0x937   :  { %4174 = vpow2.f32 %v2666_v50  ;;  %v2670_v29 = vmul.f32 1.442695, %v2655_v52  ;;  %vm2660_vm10 = vcmp.gt.f32.partialorder %v5297_v18, 14.0  ;;  %v4208_v50 = vld [vmem:[%s5419_s28 + $0x10] sm:$0xff]  }
 0x938   :  { %v5309_v49 = vmul.f32 0.5, %v5299_v19  ;;  %v2668_v55 = vmul.f32 1.442695, %v2654_v26  ;;  %v2657_v31 = vmin.f32 %v5313_v54, 14.0  ;;  %vm2663_vm13 = vcmp.gt.f32.partialorder %v5313_v54, 14.0 }
 0x93a   :  { %v2656_v58 = vmin.f32 %v5309_v49, 14.0  ;;  %4176 = vpow2.f32 %v2668_v55  ;;  %v2674_v40 = vmul.f32 1.442695, %v2657_v31  ;;  %vm2662_vm12 = vcmp.gt.f32.partialorder %v5309_v49, 14.0 }
 0x93b   :  { %4178 = vpow2.f32 %v2670_v29 }
 0x93c   :  { %v2672_v34 = vmul.f32 1.442695, %v2656_v58 }
 0x93e   :  { %4180 = vpow2.f32 %v2672_v34 }
 0x93f   :  { %4182 = vpow2.f32 %v2674_v40 }
 0x943   :  { %v4173_v46 = vpop.eup %4172 }
 0x944   :  { %v2676_v48 = vadd.f32 1.0, %v4173_v46  ;;  %v4175_v30 = vpop.eup %4174 }
 0x945   :  { %v2677_v59 = vadd.f32 1.0, %v4175_v30 }
 0x946   :  { %4184 = vlog2.f32 %v2676_v48 }
 0x947   :  { %v4177_v51 = vpop.eup %4176  ;;  %4186 = vlog2.f32 %v2677_v59 }
 0x948   :  { %v4179_v61 = vpop.eup %4178  ;;  %v2678_v2 = vadd.f32 1.0, %v4177_v51 }
 0x949   :  { %v2679_v37 = vadd.f32 1.0, %v4179_v61 }
 0x94a   :  { %4188 = vlog2.f32 %v2678_v2 }
 0x94b   :  { %v4181_v5 = vpop.eup %4180  ;;  %4190 = vlog2.f32 %v2679_v37 }
 0x94c   :  { %v4183_v11 = vpop.eup %4182  ;;  %v2680_v41 = vadd.f32 1.0, %v4181_v5 }
 0x94d   :  { %v2681_v32 = vadd.f32 1.0, %v4183_v11 }
 0x94e   :  { %4192 = vlog2.f32 %v2680_v41 }
 0x94f   :  { %4194 = vlog2.f32 %v2681_v32  ;;  %v3445_v32 = vld [vmem:[#allocation14 + $0x2] ss:$0 sm:$0xff] }
 0x953   :  { %v4185_v43 = vpop.eup %4184 }
 0x954   :  { %v2683_v28 = vmul.f32 0.6931472, %v4185_v43  ;;  %v4187_v6 = vpop.eup %4186 }
 0x955   :  { %v2685_v0 = vmul.f32 0.6931472, %v4187_v6 }
 0x956   :  { %v2694_v60 = vmul.f32 2.0, %v2683_v28 }
 0x957   :  { %v4189_v44 = vpop.eup %4188  ;;  %v2695_v13 = vmul.f32 2.0, %v2685_v0 }
 0x958   :  { %v4191_v12 = vpop.eup %4190  ;;  %v2687_v8 = vmul.f32 0.6931472, %v4189_v44 }
 0x959   :  { %v2689_v17 = vmul.f32 0.6931472, %v4191_v12 }
 0x95a   :  { %v2696_v62 = vmul.f32 2.0, %v2687_v8 }
 0x95b   :  { %v4193_v15 = vpop.eup %4192 }
 0x95c   :  { %v4195_v20 = vpop.eup %4194  ;;  %v2691_v3 = vmul.f32 0.6931472, %v4193_v15  ;;  %v2702_v10 = vsel %vm2660_vm10, %v5289_v21, %v2696_v62 }
 0x95d   :  { %v2693_v9 = vmul.f32 0.6931472, %v4195_v20 }
 0x95e   :  { %v2698_v63 = vmul.f32 2.0, %v2691_v3 }
 0x95f   :  { %v2699_v14 = vmul.f32 2.0, %v2693_v9 }
 0x960   :  { %v2704_v25 = vsel %vm2662_vm12, %v5299_v19, %v2698_v63  ;;  %v4206_v19 = vld [vmem:[%s5419_s28] sm:$0xff]  }
 0x961   :  { %v2705_v21 = vsel %vm2663_vm13, %v5305_v24, %v2699_v14  ;;  %v4207_v24 = vld [vmem:[%s5419_s28 + $0x8] sm:$0xff]   ;;  %s4575_s28 = smov 96  }
 0x9dc   :  { %v3889_v42 = vpop.f32.mrf.mxu1 }
 0x9dd   :  { %v2253_v16 = vadd.f32 %v3889_v42, %v3417_v47 }
 0x9de   :  { %v2247_v53 = vpop.f32.mrf.mxu1 }
 0x9df   :  { %v5318_v56 = vadd.f32 %v2253_v16, %v5097_v35  ;;  %v2248_v1 = vadd.f32 %v3417_v47, %v2247_v53  ;;  %v2709_v35 = vld [vmem:[#allocation13 + $0x50] sm:$0xff]  ;;  %v3452_v16 = vld [vmem:[#allocation17 + $0x2] ss:$0 sm:$0xff] }
 0x9e1   :  { %v5321_v33 = vadd.f32 %v2248_v1, %v5099_v38  ;;  %3290 = vrot.lane.b32.xlu1 %v5318_v56, %s4563_s26  ;;  %v2700_v38 = vsel %vm2658_vm6, %v5281_v36, %v2694_v60  ;;  %v2701_v36 = vsel %vm2659_vm7, %v5286_v7, %v2695_v13 }
 0x9e3   :  { %3288 = vrot.lane.b32.xlu0 %v5321_v33, %s4563_s26  ;;  %3915 = vmatprep.mubr.msk.f32.mxu1 %vm368_vm0, %v5321_v33 }
 0x9e4   :  { %3916 = vmatmul.mubr.msk.f32.vlgmr.msra.gmra.mxu1 %vm368_vm0, %v5318_v56  ;;  %v3962_v31 = vpop.f32.mrf.mxu0 }
 0x9e5   :  { %3936 = vmatpush3.msra.mxu1 %v5278_v39  ;;  %3943 = vmatprep.mubr.msk.f32.mxu1 %vm368_vm0, %v2700_v38  ;;  %v2697_v39 = vmul.f32 2.0, %v2689_v17  ;;  %v2935_v9 = vadd.f32 %v3962_v31, %v3452_v16 }
 0x9e6   :  { %3937 = vmatprep.subr.mxu1 %v2709_v35  ;;  %v2929_v46 = vpop.f32.mrf.mxu0 }
 0x9e7   :  { %3938 = vmatpush3.msra.mxu1 %v2709_v35  ;;  %v2703_v7 = vsel %vm2661_vm11, %v5294_v22, %v2697_v39 }
 0x9e8   :  { %3939 = vmatprep.subr.mxu1 %v2708_v45  ;;  %v3965_v51 = vpop.f32.mrf.mxu0 }
 0x9e9   :  { %3940 = vmatpush3.msra.mxu1 %v2708_v45  ;;  %v2945_v8 = vadd.f32 %v3965_v51, %v3452_v16 }
 0x9ea   :  { %3941 = vmatprep.subr.mxu1 %v2707_v57  ;;  %v2939_v2 = vpop.f32.mrf.mxu0 }
 0x9eb   :  { %3942 = vmatpush3.msra.mxu1 %v2707_v57  ;;  %v2940_v20 = vadd.f32 %v3452_v16, %v2939_v2 }
 0x9ec   :  { %3944 = vmatmul.mubr.msk.f32.vlgmr.msra.gmra.mxu1 %vm368_vm0, %v2701_v36  ;;  %3969 = vmatprep.subr.bf16.mxu1 %v4572_v4 }
 0x9ed   :  { %3946 = vmatprep.mubr.msk.f32.mxu1 %vm368_vm0, %v2702_v10  ;;  %v3968_v11 = vpop.f32.mrf.mxu0 }
 0x9ee   :  { %v2955_v60 = vadd.f32 %v3968_v11, %v3452_v16 }
 0x9ef   :  { %v2949_v42 = vpop.f32.mrf.mxu0 }
 0x9f0   :  { %3947 = vmatmul.mubr.msk.f32.gmra.mxu1 %vm368_vm0, %v2703_v7  ;;  %v2950_v0 = vadd.f32 %v3452_v16, %v2949_v42  ;;  %v2930_v7 = vadd.f32 %v3452_v16, %v2929_v46 }
 0x9f1   :  { %3949 = vmatprep.mubr.msk.f32.mxu1 %vm368_vm0, %v2704_v25 }
 0x9f4   :  { %3950 = vmatmul.mubr.msk.f32.gmra.mxu1 %vm368_vm0, %v2705_v21 }
 0x9f5   :  { %3971 = vmatprep.mubr.msk.bf16.mxu1 %vm4573_vm1, %v4572_v4 }
 0xaa4   :  { %v3917_v18 = vpop.f32.mrf.mxu1 }
 0xaa5   :  { %v2535_v22 = vadd.f32 %v3917_v18, %v3435_v23 }
 0xaa6   :  { %v2529_v27 = vpop.f32.mrf.mxu1 }
 0xaa7   :  { %v2530_v26 = vadd.f32 %v3435_v23, %v2529_v27  ;;  %v3076_v23 = vld [vmem:[#allocation19 + $0x58] sm:$0xff]  ;;  %v3075_v27 = vld [vmem:[#allocation19 + $0x50] sm:$0xff] }
 0xaa9   :  { %v2958_v49 = vpack.c.bf16 %v2535_v22, %v2530_v26  ;;  %v4209_v22 = vld [vmem:[#allocation7] sm:$0xff]  }
 0xaaa   :  { %v3074_v26 = vld [vmem:[#allocation19 + $0x48] sm:$0xff] }
 0xaab   :  { %3970 = vmatpush3.bf16.msra.mxu1 %v2958_v49  ;;  %v3073_v49 = vld [vmem:[#allocation19 + $0x40] sm:$0xff] }
 0xaac   :  { %v3945_v52 = vpop.f32.mrf.mxu1 }
 0xaad   :  { %v2809_v45 = vadd.f32 %v3945_v52, %v3445_v32  ;;  %v3190_v52 = vld [vmem:[#allocation22 + $0x58] sm:$0xff] }
 0xaae   :  { %3972 = vmatmul.mubr.msk.bf16.vlgmr.msra.gmra.mxu1 %vm898_vm8, %v4206_v19  ;;  %v2803_v54 = vpop.f32.mrf.mxu1  ;;  %4004 = vmatprep.subr.mxu1 %v3190_v52 }
 0xaaf   :  { %3975 = vmatprep.mubr.msk.bf16.mxu1 %vm4573_vm1, %v4572_v4  ;;  %v2804_v62 = vadd.f32 %v3445_v32, %v2803_v54  ;;  %4005 = vmatpush3.msra.mxu1 %v3190_v52  ;;  %v3189_v54 = vld [vmem:[#allocation22 + $0x50] sm:$0xff] }
 0xab0   :  { %v3948_v55 = vpop.f32.mrf.mxu1  ;;  %4006 = vmatprep.subr.mxu1 %v3189_v54 }
 0xab1   :  { %v2819_v53 = vadd.f32 %v3948_v55, %v3445_v32  ;;  %v3188_v55 = vld [vmem:[#allocation22 + $0x48] sm:$0xff]  ;;  %4007 = vmatpush3.msra.mxu1 %v3189_v54 }
 0xab2   :  { %v2813_v58 = vpop.f32.mrf.mxu1  ;;  %4008 = vmatprep.subr.mxu1 %v3188_v55 }
 0xab3   :  { %v2814_v35 = vadd.f32 %v3445_v32, %v2813_v58  ;;  %v3187_v58 = vld [vmem:[#allocation22 + $0x40] sm:$0xff]  ;;  %4009 = vmatpush3.msra.mxu1 %v3188_v55 }
 0xab4   :  { %v3951_v29 = vpop.f32.mrf.mxu1  ;;  %4010 = vmatprep.subr.mxu1 %v3187_v58 }
 0xab5   :  { %v2829_v1 = vadd.f32 %v3951_v29, %v3445_v32  ;;  %4011 = vmatpush3.msra.mxu1 %v3187_v58  ;;  %v3463_v29 = vld [vmem:[#allocation20 + $0x2] ss:$0 sm:$0xff] }
 0xab6   :  { %3976 = vmatmul.mubr.msk.bf16.gmra.mxu1 %vm898_vm8, %v4207_v24  ;;  %v2823_v34 = vpop.f32.mrf.mxu1 }
 0xab7   :  { %3979 = vmatprep.mubr.msk.bf16.mxu1 %vm4573_vm1, %v4572_v4  ;;  %v2824_v47 = vadd.f32 %v3445_v32, %v2823_v34 }
 0xabe   :  { %3980 = vmatmul.mubr.msk.bf16.gmra.mxu1 %vm898_vm8, %v4208_v50 }
 0xb6e   :  { %v2993_v40 = vpop.f32.mrf.mxu1 }
 0xb6f   :  { %v3016_v10 = vmul.f32 %v2993_v40, %v2804_v62 }
 0xb70   :  { %v3973_v48 = vpop.f32.mrf.mxu1 }
 0xb71   :  { %v3022_v21 = vadd.f32 %v3016_v10, %v2930_v7 }
 0xb72   :  { %v2996_v30 = vpop.f32.mrf.mxu1 }
 0xb73   :  { %v3017_v3 = vmul.f32 %v2996_v30, %v2809_v45 }
 0xb74   :  { %v3974_v59 = vpop.f32.mrf.mxu1 }
 0xb75   :  { %v3023_v14 = vadd.f32 %v3017_v3, %v2935_v9 }
 0xb76   :  { %v3001_v61 = vpop.f32.mrf.mxu1 }
 0xb77   :  { %v3018_v13 = vmul.f32 %v3001_v61, %v2814_v35  ;;  %v3028_v18 = vpack.c.bf16 %v3023_v14, %v3022_v21 }
 0xb78   :  { %v3977_v5 = vpop.f32.mrf.mxu1 }
 0xb79   :  { %v3024_v63 = vadd.f32 %v3018_v13, %v2940_v20 }
 0xb7a   :  { %v3004_v37 = vpop.f32.mrf.mxu1 }
 0xb7b   :  { %v3019_v12 = vmul.f32 %v3004_v37, %v2819_v53 }
 0xb7c   :  { %v3978_v41 = vpop.f32.mrf.mxu1 }
 0xb7d   :  { %v3025_v36 = vadd.f32 %v3019_v12, %v2945_v8  ;;  %v3285_v8 = vpop.permute.xlu1 %3284 }
 0xb7e   :  { %v3009_v43 = vpop.f32.mrf.mxu1 }
 0xb7f   :  { %v3020_v6 = vmul.f32 %v3009_v43, %v2824_v47  ;;  %v3029_v25 = vpack.c.bf16 %v3025_v36, %v3024_v63 }
 0xb80   :  { %v3981_v28 = vpop.f32.mrf.mxu1 }
 0xb81   :  { %v3026_v57 = vadd.f32 %v3020_v6, %v2950_v0  ;;  %v3466_v6 = vld [vmem:[#allocation23 + $0x2] ss:$0 sm:$0xff]  ;;  %v3291_v45 = vpop.permute.xlu1 %3290 }
 0xb82   :  { %v3012_v44 = vpop.f32.mrf.mxu1 }
 0xb83   :  { %v3021_v38 = vmul.f32 %v3012_v44, %v2829_v1 }
 0xb84   :  { %v3982_v15 = vpop.f32.mrf.mxu1 }
 0xb85   :  { %v3027_v17 = vadd.f32 %v3021_v38, %v2955_v60  ;;  %v3283_v15 = vpop.permute.xlu0 %3282 }
 0xb87   :  { %v3030_v39 = vpack.c.bf16 %v3027_v17, %v3026_v57  ;;  %v4210_v57 = vld [vmem:[#allocation2 + $0x8] sm:$0xff] }
 0xb88   :  { %v3303_v17 = vsel %vm368_vm0, %v4210_v57, %v3285_v8 }
 0xb89   :  { %3984 = vmatpush3.bf16.msra.mxu0 %v3030_v39  ;;  %v3289_v13 = vpop.permute.xlu0 %3288 }
 0xb8a   :  { %3985 = vmatprep.subr.bf16.mxu0 %v4572_v4 }
 0xb8d   :  { %3986 = vmatpush3.bf16.msra.mxu0 %v3029_v25 }
 0xb8e   :  { %3987 = vmatprep.subr.bf16.mxu0 %v4572_v4 }
 0xb91   :  { %3988 = vmatpush3.bf16.msra.mxu0 %v3028_v18 }
 0xb92   :  { %3993 = vmatprep.subr.mxu0 %v3076_v23 }
 0xb94   :  { %3990 = vmatmul.mubr.msk.bf16.vlgmr.msra.gmra.mxu0 %vm985_vm9, %v4209_v22  ;;  %vm3304_vm9 = vcmask 523264  }
 0xb95   :  { %3994 = vmatpush3.msra.mxu0 %v3076_v23  ;;  %v3306_v20 = vsel %vm3304_vm9, %v3303_v17, %v3291_v45 }
 0xb96   :  { %3995 = vmatprep.subr.mxu0 %v3075_v27 }
 0xb97   :  { %3996 = vmatpush3.msra.mxu0 %v3075_v27 }
 0xb98   :  { %3997 = vmatprep.subr.mxu0 %v3074_v26 }
 0xb99   :  { %3998 = vmatpush3.msra.mxu0 %v3074_v26 }
 0xb9a   :  { %3999 = vmatprep.subr.mxu0 %v3073_v49 }
 0xb9b   :  { %4000 = vmatpush3.msra.mxu0 %v3073_v49 }
 0xc54   :  { %v3065_v19 = vpop.f32.mrf.mxu0 }
 0xc55   :  { %4001 = vmatprep.mubr.msk.f32.mxu0 %vm368_vm0, %v3065_v19 }
 0xc56   :  { %v3991_v4 = vpop.f32.mrf.mxu0 }
 0xc58   :  { %v3068_v24 = vpop.f32.mrf.mxu0 }
 0xc59   :  { %4002 = vmatmul.mubr.msk.f32.vlgmr.msra.gmra.mxu0 %vm368_vm0, %v3068_v24 }
 0xc5a   :  { %v3992_v50 = vpop.f32.mrf.mxu0 }
 0xd19   :  { %v4003_v31 = vpop.f32.mrf.mxu0 }
 0xd1a   :  { %v3163_v34 = vadd.f32 %v4003_v31, %v3463_v29 }
 0xd1b   :  { %v3157_v40 = vpop.f32.mrf.mxu0 }
 0xd1c   :  { %v3167_v46 = vmul.f32 0.5, %v3163_v34  ;;  %v3158_v48 = vadd.f32 %v3463_v29, %v3157_v40 }
 0xd1e   :  { %v3169_v30 = vmin.f32 %v3167_v46, 14.0  ;;  %v3166_v51 = vmul.f32 0.5, %v3158_v48  ;;  %vm3171_vm8 = vcmp.gt.f32.partialorder %v3167_v46, 14.0 }
 0xd20   :  { %v3174_v59 = vmul.f32 1.442695, %v3169_v30  ;;  %v3168_v61 = vmin.f32 %v3166_v51, 14.0  ;;  %vm3170_vm1 = vcmp.gt.f32.partialorder %v3166_v51, 14.0 }
 0xd22   :  { %4196 = vpow2.f32 %v3174_v59  ;;  %v3172_v2 = vmul.f32 1.442695, %v3168_v61 }
 0xd24   :  { %4198 = vpow2.f32 %v3172_v2 }
 0xd2f   :  { %v4197_v5 = vpop.eup %4196 }
 0xd30   :  { %v3177_v37 = vadd.f32 1.0, %v4197_v5 }
 0xd31   :  { %v4199_v11 = vpop.eup %4198 }
 0xd32   :  { %4200 = vlog2.f32 %v3177_v37  ;;  %v3176_v41 = vadd.f32 1.0, %v4199_v11 }
 0xd34   :  { %4202 = vlog2.f32 %v3176_v41 }
 0xd3f   :  { %v4201_v32 = vpop.eup %4200 }
 0xd40   :  { %v3181_v43 = vmul.f32 0.6931472, %v4201_v32 }
 0xd41   :  { %v4203_v47 = vpop.eup %4202 }
 0xd42   :  { %v3179_v42 = vmul.f32 0.6931472, %v4203_v47  ;;  %v3183_v28 = vmul.f32 2.0, %v3181_v43 }
 0xd44   :  { %v3182_v16 = vmul.f32 2.0, %v3179_v42  ;;  %v3185_v1 = vsel %vm3171_vm8, %v3163_v34, %v3183_v28 }
 0xd46   :  { %v3184_v53 = vsel %vm3170_vm1, %v3158_v48, %v3182_v16 }
 0xd47   :  { %4012 = vmatprep.mubr.msk.f32.mxu1 %vm368_vm0, %v3184_v53 }
 0xd48   :  { %4013 = vmatmul.mubr.msk.f32.vlgmr.msra.gmra.mxu1 %vm368_vm0, %v3185_v1 }
 0xe08   :  { %v4014_v60 = vpop.f32.mrf.mxu1 }
 0xe09   :  { %v3277_v44 = vadd.f32 %v4014_v60, %v3466_v6 }
 0xe0a   :  { %v3271_v0 = vpop.f32.mrf.mxu1 }
 0xe0b   :  { %v3281_v35 = vadd.f32 %v3277_v44, %v5318_v56  ;;  %v3272_v12 = vadd.f32 %v3466_v6, %v3271_v0  ;;  %v4211_v56 = vld [vmem:[#allocation2] sm:$0xff] }
 0xe0c   :  { %v3302_v3 = vsel %vm368_vm0, %v4211_v56, %v3283_v15 }
 0xe0d   :  { %v3280_v38 = vadd.f32 %v3272_v12, %v5321_v33  ;;  %3298 = vrot.lane.b32.xlu1 %v3281_v35, %s4575_s28  ;;  %v3305_v36 = vsel %vm3304_vm9, %v3302_v3, %v3289_v13 }
 0xe0f   :  { %3296 = vrot.lane.b32.xlu0 %v3280_v38, %s4575_s28 }
 0xe7f   :  { %v3299_v62 = vpop.permute.xlu1 %3298 }
 0xe80   :  { %v3309_v33 = vsel %vm3307_vm14, %v3306_v20, %v3299_v62 }
 0xe81   :  { %3311 = vst [vmem:[#allocation26 + $0x8] sm:$0xff] %v3309_v33  ;;  %v3297_v39 = vpop.permute.xlu0 %3296 }
 0xe82   :  { %v3308_v9 = vsel %vm3307_vm14, %v3305_v36, %v3297_v39 }
 0xe83   :  { %3310 = vst [vmem:[#allocation26] sm:$0xff] %v3308_v9 }
 0xe84   :  { %4523 = shalt.err (!%p4520_p9)
}
 0xe85   :  { %3323 = dma.vmem_to_hbm [thread:$0]  %s3318_s3, 256, %s5406_s20, [#allocation4], %s4560_s22, %s4560_s22, %s4561_s9  }
 0xe86   :  { %4548 = dma.done.wait [#allocation4], 256  }
 0xe87   :  { %4549 = vsyncadd [#allocation4], 4294967040 }
 0xe88   :  { %3327 = vsyncpa [#allocation3], 1 }
 0xe89   :  { %3328 = vsyncpa [#allocation6], 1 }
 0xe8a   :  { %3329 = vsyncpa [#allocation9], 1 }
 0xe8b   :  { %3330 = vsyncpa [#allocation12], 1 }
 0xe8c   :  { %3331 = vsyncpa [#allocation15], 1 }
 0xe8d   :  { %3332 = vsyncpa [#allocation18], 1 }
 0xe8e   :  { %3333 = vsyncpa [#allocation21], 1 }
 0xe8f   :  { %3334 = vsyncpa [#allocation24], 1 }
 0xe90   :  { %3335 = vsyncpa [#allocation4], 1 }

</bundles_post_ra>
